<compile_context>
chip_gen: v7x
topology: tpu7x:2x2x1
jax: 0.10.0
libtpu: 0.0.40
codegen_flags: <defaults>
</compile_context>

<pallas_src>
import functools
import math

import jax
import jax.numpy as jnp
from jax.experimental import pallas as pl
from jax.experimental.pallas import tpu as pltpu


# --------------------------------------------------------------------------
# Stage 1: per-token linear projection -> head-major bf16
# --------------------------------------------------------------------------
def _proj_kernel(x_ref, w_ref, b_ref, o_ref, *, heads, d_k, scale):
    f32, bf16 = jnp.float32, jnp.bfloat16

    x = x_ref[0]                                             # (TR, D) bf16
    y = jnp.dot(x, w_ref[...], preferred_element_type=f32) + b_ref[...]
    if scale != 1.0:                                         # fold 1/sqrt(d_k) into Q
        y = y * scale
    y = y.astype(bf16)                                       # cast BEFORE the relayout
    tr = y.shape[0]
    # (TR, D) -> (heads, TR, d_k): done once per token here, never in the
    # attention kernel's KV loop.
    o_ref[0] = jnp.transpose(y.reshape(tr, heads, d_k), (1, 0, 2))


def _project(x, w_t, b, *, heads, d_k, scale, row_tile, vmem_limit):
    """x: (bs, S, D) bf16 -> (bs, heads, S, d_k) bf16 (head-major projection)."""
    bs, S, D = x.shape
    tr = row_tile
    nr = S // tr

    kernel = functools.partial(_proj_kernel, heads=heads, d_k=d_k, scale=scale)
    return pl.pallas_call(
        kernel,
        out_shape=jax.ShapeDtypeStruct((bs, heads, S, d_k), jnp.bfloat16),
        grid_spec=pltpu.PrefetchScalarGridSpec(
            num_scalar_prefetch=0,
            grid=(bs, nr),
            in_specs=[
                pl.BlockSpec((1, tr, D), lambda bi, ri: (bi, ri, 0)),
                pl.BlockSpec((D, D), lambda bi, ri: (0, 0)),      # constant: no re-DMA
                pl.BlockSpec((1, D), lambda bi, ri: (0, 0)),
            ],
            out_specs=pl.BlockSpec((1, heads, tr, d_k), lambda bi, ri: (bi, 0, ri, 0)),
        ),
        compiler_params=pltpu.CompilerParams(
            dimension_semantics=("parallel", "parallel"),
            vmem_limit_bytes=vmem_limit,
        ),
    )(x, w_t, b)


# --------------------------------------------------------------------------
# Stage 2: flash-style attention + fused output projection
# --------------------------------------------------------------------------
def _attn_kernel(q_ref, k_ref, v_ref, wo_ref, bo_ref, o_ref, m_sc, l_sc, acc_sc):
    f32, bf16 = jnp.float32, jnp.bfloat16
    ki = pl.program_id(2)

    @pl.when(ki == 0)
    def _():
        m_sc[...] = jnp.full_like(m_sc, -jnp.inf)
        l_sc[...] = jnp.zeros_like(l_sc)
        acc_sc[...] = jnp.zeros_like(acc_sc)

    q = q_ref[0]                      # (heads, TQ,  d_k) bf16, pre-scaled
    k = k_ref[0]                      # (heads, TKV, d_k) bf16
    v = v_ref[0]                      # (heads, TKV, d_k) bf16

    # Scores for all heads in one batched contraction (no explicit K^T).
    s = jnp.einsum('hqd,hkd->hqk', q, k, preferred_element_type=f32)

    # Online (streaming) softmax update.
    m_prev = m_sc[...]
    m_new = jnp.maximum(m_prev, jnp.max(s, axis=-1, keepdims=True))
    alpha = jnp.exp(m_prev - m_new)
    p = jnp.exp(s - m_new)
    l_sc[...] = alpha * l_sc[...] + jnp.sum(p, axis=-1, keepdims=True)
    acc_sc[...] = alpha * acc_sc[...] + jnp.einsum(
        'hqk,hkd->hqd', p.astype(bf16), v, preferred_element_type=f32)
    m_sc[...] = m_new

    @pl.when(ki == pl.num_programs(2) - 1)
    def _():
        # Softmax denominator reciprocal on the EUP (approx; rows sum ~= 1,
        # well inside the bf16-driven tolerance).
        oh = acc_sc[...] * pl.reciprocal(l_sc[...], approx=True)
        heads, tq, d_k = oh.shape
        # (heads, TQ, d_k) -> (TQ, D): same data movement as PyTorch's
        # transpose(1,2).contiguous().view(bs, -1, d_model), done once per
        # output tile, in bf16.
        concat = jnp.transpose(oh.astype(bf16), (1, 0, 2)).reshape(tq, heads * d_k)
        out = jnp.dot(concat, wo_ref[...], preferred_element_type=f32) + bo_ref[...]
        o_ref[0] = out.astype(o_ref.dtype)


# --------------------------------------------------------------------------
# Tiling helpers
# --------------------------------------------------------------------------
def _pick_tile(S, target):
    """Tile that divides S: prefer MXU-friendly multiples of 256/128, then the
    largest multiple of 8 that divides S (<= target), else full S."""
    if S <= target:
        return S
    for align in (256, 128, 8):
        t = (min(target, S) // align) * align
        while t >= align:
            if S % t == 0:
                return t
            t -= align
    return S


def _default_tile_targets():
    """Generation-aware defaults: bigger tiles on 128 MiB VMEM (v5e/v6e),
    conservative on v7x's 64 MiB per TensorCore."""
    try:
        vmem = pltpu.get_tpu_info().vmem_capacity_bytes
    except Exception:
        vmem = 64 * 1024 * 1024
    if vmem >= 96 * 1024 * 1024:
        return 512, 512      # v5e / v6e
    return 256, 512          # v7x (keep TQ <= 256)


# --------------------------------------------------------------------------
# Wrapper
# --------------------------------------------------------------------------
def multi_head_attention(q, k, v, params, *, heads,
                         q_tile_target=None, kv_tile_target=None,
                         out_dtype=jnp.float32):
    """q: (bs, Sq, d_model), k/v: (bs, Skv, d_model). params: transposed weights."""
    bs, Sq, D = q.shape
    _, Skv, _ = k.shape
    assert k.shape == v.shape and k.shape[0] == bs and k.shape[2] == D
    assert D % heads == 0, "d_model must be divisible by heads"
    d_k = D // heads
    scale = 1.0 / math.sqrt(d_k)

    dflt_q, dflt_kv = _default_tile_targets()
    q_tile_target = dflt_q if q_tile_target is None else q_tile_target
    kv_tile_target = dflt_kv if kv_tile_target is None else kv_tile_target
    TQ = _pick_tile(Sq, q_tile_target)
    TKV = _pick_tile(Skv, kv_tile_target)
    nq, nkv = Sq // TQ, Skv // TKV

    vmem_limit = 48 * 1024 * 1024   # safe on all generations (v7x physical = 64 MiB)

    bf16 = jnp.bfloat16
    # Host-side bf16: halves activation + weight DMA; biases stay f32.
    qb, kb, vb = q.astype(bf16), k.astype(bf16), v.astype(bf16)
    wq, wk, wv, wo = (params[n].astype(bf16) for n in ("wq_t", "wk_t", "wv_t", "wo_t"))

    # ---- Stage 1: projections, computed once, head-major bf16 ----
    Qh = _project(qb, wq, params["bq"], heads=heads, d_k=d_k, scale=scale,
                  row_tile=TQ, vmem_limit=vmem_limit)
    Kh = _project(kb, wk, params["bk"], heads=heads, d_k=d_k, scale=1.0,
                  row_tile=TKV, vmem_limit=vmem_limit)
    Vh = _project(vb, wv, params["bv"], heads=heads, d_k=d_k, scale=1.0,
                  row_tile=TKV, vmem_limit=vmem_limit)

    # ---- Stage 2: flash attention + fused output projection ----
    return pl.pallas_call(
        _attn_kernel,
        out_shape=jax.ShapeDtypeStruct((bs, Sq, D), out_dtype),
        grid_spec=pltpu.PrefetchScalarGridSpec(
            num_scalar_prefetch=0,
            grid=(bs, nq, nkv),
            in_specs=[
                pl.BlockSpec((1, heads, TQ, d_k), lambda b, qi, ki: (b, 0, qi, 0)),
                pl.BlockSpec((1, heads, TKV, d_k), lambda b, qi, ki: (b, 0, ki, 0)),
                pl.BlockSpec((1, heads, TKV, d_k), lambda b, qi, ki: (b, 0, ki, 0)),
                pl.BlockSpec((D, D), lambda b, qi, ki: (0, 0)),   # constant: no re-DMA
                pl.BlockSpec((1, D), lambda b, qi, ki: (0, 0)),
            ],
            out_specs=pl.BlockSpec((1, TQ, D), lambda b, qi, ki: (b, qi, 0)),
            scratch_shapes=[
                pltpu.VMEM((heads, TQ, 1), jnp.float32),     # m (running max)
                pltpu.VMEM((heads, TQ, 1), jnp.float32),     # l (running denom)
                pltpu.VMEM((heads, TQ, d_k), jnp.float32),   # acc
            ],
        ),
        compiler_params=pltpu.CompilerParams(
            dimension_semantics=("parallel", "parallel", "arbitrary"),
            vmem_limit_bytes=vmem_limit,
        ),
    )(Qh, Kh, Vh, wo, params["bo"])


# --------------------------------------------------------------------------
# Params / reference / test
# --------------------------------------------------------------------------
def init_params(key, d_model):
    """Deterministic nn.Linear-style init (uniform +/- 1/sqrt(fan_in)), f32.
    Weights stored transposed: y = x @ W_t + b."""
    bound = 1.0 / math.sqrt(d_model)
    keys = jax.random.split(key, 8)

    def w(kk):
        return jax.random.uniform(kk, (d_model, d_model), jnp.float32, -bound, bound)

    def b(kk):
        return jax.random.uniform(kk, (1, d_model), jnp.float32, -bound, bound)

    return {
        "wq_t": w(keys[0]), "bq": b(keys[1]),
        "wk_t": w(keys[2]), "bk": b(keys[3]),
        "wv_t": w(keys[4]), "bv": b(keys[5]),
        "wo_t": w(keys[6]), "bo": b(keys[7]),
    }


def _reference(q, k, v, params, *, heads):
    """Pure-JAX f32 reference matching the PyTorch forward (mask=None, alphas=None, eval)."""
    bs, Sq, D = q.shape
    Skv = k.shape[1]
    d_k = D // heads

    def lin(x, w_t, b):
        return x @ w_t + b

    Q = lin(q, params["wq_t"], params["bq"]).reshape(bs, Sq, heads, d_k).transpose(0, 2, 1, 3)
    K = lin(k, params["wk_t"], params["bk"]).reshape(bs, Skv, heads, d_k).transpose(0, 2, 1, 3)
    V = lin(v, params["wv_t"], params["bv"]).reshape(bs, Skv, heads, d_k).transpose(0, 2, 1, 3)
    scores = jnp.einsum("bhqd,bhkd->bhqk", Q, K) / math.sqrt(d_k)
    p = jax.nn.softmax(scores, axis=-1)
    o = jnp.einsum("bhqk,bhkd->bhqd", p, V)
    concat = o.transpose(0, 2, 1, 3).reshape(bs, Sq, D)
    return concat @ params["wo_t"] + params["bo"]


if __name__ == "__main__":
    heads, d_model = 4, 32
    bs, seq = 2, 8

    key = jax.random.PRNGKey(0)
    kq, kk, kv, kp = jax.random.split(key, 4)
    q = jax.random.normal(kq, (bs, seq, d_model), jnp.float32)
    k = jax.random.normal(kk, (bs, seq, d_model), jnp.float32)
    v = jax.random.normal(kv, (bs, seq, d_model), jnp.float32)
    params = init_params(kp, d_model)

    fn = jax.jit(functools.partial(multi_head_attention, heads=heads))
    out = jax.block_until_ready(fn(q, k, v, params))

    ref = _reference(q, k, v, params, heads=heads)
    assert out.shape == (bs, seq, d_model)
    # Tolerance reflects bf16 MXU operands (f32 accumulation) vs the pure-f32 reference.
    assert jnp.allclose(out, ref, atol=3e-2, rtol=3e-2), "mismatch vs pure-JAX reference"

    print("KERNEL_OK")
</pallas_src>

<mosaic_0001>
module attributes {stable_mosaic.version = 11 : i64} {
  func.func @_proj_kernel(%arg0: i32, %arg1: i32, %arg2: memref<1x8x32xbf16, #tpu.memory_space<vmem>>, %arg3: memref<32x32xbf16, #tpu.memory_space<vmem>>, %arg4: memref<1x32xf32, #tpu.memory_space<vmem>>, %arg5: memref<1x4x8x8xbf16, #tpu.memory_space<vmem>>) attributes {dimension_semantics = [#tpu.dimension_semantics<parallel>, #tpu.dimension_semantics<parallel>], iteration_bounds = array<i64: 2, 1>, scalar_prefetch = 0 : i64, scratch_operands = 0 : i64, tpu.core_type = #tpu.core_type<tc>, window_params = [{transform_indices = @transform_0, window_bounds = array<i64: 1, 8, 32>}, {pipeline_mode = #tpu.pipeline_mode<synchronous>, transform_indices = @transform_1, window_bounds = array<i64: 32, 32>}, {pipeline_mode = #tpu.pipeline_mode<synchronous>, transform_indices = @transform_2, window_bounds = array<i64: 1, 32>}, {transform_indices = @transform_3, window_bounds = array<i64: 1, 4, 8, 8>}]} {
    %c0 = arith.constant 0 : index
    %c0_0 = arith.constant 0 : index
    %c0_1 = arith.constant 0 : index
    %0 = vector.load %arg2[%c0, %c0_0, %c0_1] : memref<1x8x32xbf16, #tpu.memory_space<vmem>>, vector<1x8x32xbf16>
    %1 = vector.shape_cast %0 : vector<1x8x32xbf16> to vector<8x32xbf16>
    %c0_2 = arith.constant 0 : index
    %c0_3 = arith.constant 0 : index
    %2 = vector.load %arg3[%c0_2, %c0_3] : memref<32x32xbf16, #tpu.memory_space<vmem>>, vector<32x32xbf16>
    %cst = arith.constant dense<0.000000e+00> : vector<8x32xf32>
    %3 = tpu.matmul %1, %2, %cst {dimension_numbers = #tpu.dot_dimension_numbers<[1], [0], [0], [1], [0, 0, 1, 1], [], []>} : vector<8x32xbf16>, vector<32x32xbf16>, vector<8x32xf32> -> vector<8x32xf32>
    %c0_4 = arith.constant 0 : index
    %c0_5 = arith.constant 0 : index
    %4 = vector.load %arg4[%c0_4, %c0_5] : memref<1x32xf32, #tpu.memory_space<vmem>>, vector<1x32xf32>
    %5 = vector.broadcast %4 : vector<1x32xf32> to vector<8x32xf32>
    %6 = arith.addf %3, %5 : vector<8x32xf32>
    %7 = arith.truncf %6 : vector<8x32xf32> to vector<8x32xbf16>
    %8 = vector.shape_cast %7 : vector<8x32xbf16> to vector<8x4x8xbf16>
    %9 = tpu.transpose %8, [1, 0, 2] : vector<8x4x8xbf16> -> vector<4x8x8xbf16>
    %c0_6 = arith.constant 0 : index
    %c0_7 = arith.constant 0 : index
    %c0_8 = arith.constant 0 : index
    %c0_9 = arith.constant 0 : index
    %10 = vector.load %arg5[%c0_6, %c0_7, %c0_8, %c0_9] : memref<1x4x8x8xbf16, #tpu.memory_space<vmem>>, vector<1x4x8x8xbf16>
    %11 = vector.shape_cast %10 : vector<1x4x8x8xbf16> to vector<4x8x8xbf16>
    %12 = vector.shape_cast %9 : vector<4x8x8xbf16> to vector<1x4x8x8xbf16>
    tpu.vector_store %arg5[%c0_6, %c0_7, %c0_8, %c0_9], %12 {strides = array<i32>} : memref<1x4x8x8xbf16, #tpu.memory_space<vmem>>, vector<1x4x8x8xbf16>,
    return
  }
  func.func @transform_0(%arg0: i32, %arg1: i32) -> (i32, i32, i32) {
    %c0_i32 = arith.constant 0 : i32
    %c0_i32_0 = arith.constant 0 : i32
    return %arg0, %arg1, %c0_i32 : i32, i32, i32
  }
  func.func @transform_1(%arg0: i32, %arg1: i32) -> (i32, i32) {
    %c0_i32 = arith.constant 0 : i32
    %c0_i32_0 = arith.constant 0 : i32
    %c0_i32_1 = arith.constant 0 : i32
    return %c0_i32, %c0_i32_0 : i32, i32
  }
  func.func @transform_2(%arg0: i32, %arg1: i32) -> (i32, i32) {
    %c0_i32 = arith.constant 0 : i32
    %c0_i32_0 = arith.constant 0 : i32
    %c0_i32_1 = arith.constant 0 : i32
    return %c0_i32, %c0_i32_0 : i32, i32
  }
  func.func @transform_3(%arg0: i32, %arg1: i32) -> (i32, i32, i32, i32) {
    %c0_i32 = arith.constant 0 : i32
    %c0_i32_0 = arith.constant 0 : i32
    %c0_i32_1 = arith.constant 0 : i32
    return %arg0, %c0_i32, %arg1, %c0_i32_0 : i32, i32, i32, i32
  }
}

module attributes {stable_mosaic.version = 11 : i64} {
  func.func @_proj_kernel(%arg0: i32, %arg1: i32, %arg2: memref<1x8x32xbf16, #tpu.memory_space<vmem>>, %arg3: memref<32x32xbf16, #tpu.memory_space<vmem>>, %arg4: memref<1x32xf32, #tpu.memory_space<vmem>>, %arg5: memref<1x4x8x8xbf16, #tpu.memory_space<vmem>>) attributes {dimension_semantics = [#tpu.dimension_semantics<parallel>, #tpu.dimension_semantics<parallel>], iteration_bounds = array<i64: 2, 1>, scalar_prefetch = 0 : i64, scratch_operands = 0 : i64, tpu.core_type = #tpu.core_type<tc>, window_params = [{transform_indices = @transform_0, window_bounds = array<i64: 1, 8, 32>}, {pipeline_mode = #tpu.pipeline_mode<synchronous>, transform_indices = @transform_1, window_bounds = array<i64: 32, 32>}, {pipeline_mode = #tpu.pipeline_mode<synchronous>, transform_indices = @transform_2, window_bounds = array<i64: 1, 32>}, {transform_indices = @transform_3, window_bounds = array<i64: 1, 4, 8, 8>}]} {
    %c0 = arith.constant 0 : index
    %c0_0 = arith.constant 0 : index
    %c0_1 = arith.constant 0 : index
    %0 = vector.load %arg2[%c0, %c0_0, %c0_1] : memref<1x8x32xbf16, #tpu.memory_space<vmem>>, vector<1x8x32xbf16>
    %1 = vector.shape_cast %0 : vector<1x8x32xbf16> to vector<8x32xbf16>
    %c0_2 = arith.constant 0 : index
    %c0_3 = arith.constant 0 : index
    %2 = vector.load %arg3[%c0_2, %c0_3] : memref<32x32xbf16, #tpu.memory_space<vmem>>, vector<32x32xbf16>
    %cst = arith.constant dense<0.000000e+00> : vector<8x32xf32>
    %3 = tpu.matmul %1, %2, %cst {dimension_numbers = #tpu.dot_dimension_numbers<[1], [0], [0], [1], [0, 0, 1, 1], [], []>} : vector<8x32xbf16>, vector<32x32xbf16>, vector<8x32xf32> -> vector<8x32xf32>
    %c0_4 = arith.constant 0 : index
    %c0_5 = arith.constant 0 : index
    %4 = vector.load %arg4[%c0_4, %c0_5] : memref<1x32xf32, #tpu.memory_space<vmem>>, vector<1x32xf32>
    %5 = vector.broadcast %4 : vector<1x32xf32> to vector<8x32xf32>
    %6 = arith.addf %3, %5 : vector<8x32xf32>
    %cst_6 = arith.constant 0.353553385 : f32
    %7 = vector.broadcast %cst_6 : f32 to vector<8x32xf32>
    %8 = arith.mulf %6, %7 : vector<8x32xf32>
    %9 = arith.truncf %8 : vector<8x32xf32> to vector<8x32xbf16>
    %10 = vector.shape_cast %9 : vector<8x32xbf16> to vector<8x4x8xbf16>
    %11 = tpu.transpose %10, [1, 0, 2] : vector<8x4x8xbf16> -> vector<4x8x8xbf16>
    %c0_7 = arith.constant 0 : index
    %c0_8 = arith.constant 0 : index
    %c0_9 = arith.constant 0 : index
    %c0_10 = arith.constant 0 : index
    %12 = vector.load %arg5[%c0_7, %c0_8, %c0_9, %c0_10] : memref<1x4x8x8xbf16, #tpu.memory_space<vmem>>, vector<1x4x8x8xbf16>
    %13 = vector.shape_cast %12 : vector<1x4x8x8xbf16> to vector<4x8x8xbf16>
    %14 = vector.shape_cast %11 : vector<4x8x8xbf16> to vector<1x4x8x8xbf16>
    tpu.vector_store %arg5[%c0_7, %c0_8, %c0_9, %c0_10], %14 {strides = array<i32>} : memref<1x4x8x8xbf16, #tpu.memory_space<vmem>>, vector<1x4x8x8xbf16>,
    return
  }
  func.func @transform_0(%arg0: i32, %arg1: i32) -> (i32, i32, i32) {
    %c0_i32 = arith.constant 0 : i32
    %c0_i32_0 = arith.constant 0 : i32
    return %arg0, %arg1, %c0_i32 : i32, i32, i32
  }
  func.func @transform_1(%arg0: i32, %arg1: i32) -> (i32, i32) {
    %c0_i32 = arith.constant 0 : i32
    %c0_i32_0 = arith.constant 0 : i32
    %c0_i32_1 = arith.constant 0 : i32
    return %c0_i32, %c0_i32_0 : i32, i32
  }
  func.func @transform_2(%arg0: i32, %arg1: i32) -> (i32, i32) {
    %c0_i32 = arith.constant 0 : i32
    %c0_i32_0 = arith.constant 0 : i32
    %c0_i32_1 = arith.constant 0 : i32
    return %c0_i32, %c0_i32_0 : i32, i32
  }
  func.func @transform_3(%arg0: i32, %arg1: i32) -> (i32, i32, i32, i32) {
    %c0_i32 = arith.constant 0 : i32
    %c0_i32_0 = arith.constant 0 : i32
    %c0_i32_1 = arith.constant 0 : i32
    return %arg0, %c0_i32, %arg1, %c0_i32_0 : i32, i32, i32, i32
  }
}

module attributes {stable_mosaic.version = 11 : i64} {
  func.func @_attn_kernel(%arg0: i32, %arg1: i32, %arg2: i32, %arg3: memref<1x4x8x8xbf16, #tpu.memory_space<vmem>>, %arg4: memref<1x4x8x8xbf16, #tpu.memory_space<vmem>>, %arg5: memref<1x4x8x8xbf16, #tpu.memory_space<vmem>>, %arg6: memref<32x32xbf16, #tpu.memory_space<vmem>>, %arg7: memref<1x32xf32, #tpu.memory_space<vmem>>, %arg8: memref<1x8x32xf32, #tpu.memory_space<vmem>>, %arg9: memref<4x8x1xf32, #tpu.memory_space<vmem>>, %arg10: memref<4x8x1xf32, #tpu.memory_space<vmem>>, %arg11: memref<4x8x8xf32, #tpu.memory_space<vmem>>) attributes {dimension_semantics = [#tpu.dimension_semantics<parallel>, #tpu.dimension_semantics<parallel>, #tpu.dimension_semantics<arbitrary>], iteration_bounds = array<i64: 2, 1, 1>, scalar_prefetch = 0 : i64, scratch_operands = 3 : i64, tpu.core_type = #tpu.core_type<tc>, window_params = [{transform_indices = @transform_0, window_bounds = array<i64: 1, 4, 8, 8>}, {transform_indices = @transform_1, window_bounds = array<i64: 1, 4, 8, 8>}, {transform_indices = @transform_2, window_bounds = array<i64: 1, 4, 8, 8>}, {pipeline_mode = #tpu.pipeline_mode<synchronous>, transform_indices = @transform_3, window_bounds = array<i64: 32, 32>}, {pipeline_mode = #tpu.pipeline_mode<synchronous>, transform_indices = @transform_4, window_bounds = array<i64: 1, 32>}, {transform_indices = @transform_5, window_bounds = array<i64: 1, 8, 32>}]} {
    %c0_i32 = arith.constant 0 : i32
    %0 = arith.cmpi eq, %arg2, %c0_i32 : i32
    %1 = arith.extui %0 : i1 to i32
    %c0_i32_0 = arith.constant 0 : i32
    %2 = arith.cmpi ne, %1, %c0_i32_0 : i32
    scf.if %2 {
      %cst_35 = arith.constant 0xFF800000 : f32
      %36 = vector.broadcast %cst_35 : f32 to vector<4x8x1xf32>
      %c0_36 = arith.constant 0 : index
      %c0_37 = arith.constant 0 : index
      %c0_38 = arith.constant 0 : index
      %37 = vector.load %arg9[%c0_36, %c0_37, %c0_38] : memref<4x8x1xf32, #tpu.memory_space<vmem>>, vector<4x8x1xf32>
      tpu.vector_store %arg9[%c0_36, %c0_37, %c0_38], %36 {strides = array<i32>} : memref<4x8x1xf32, #tpu.memory_space<vmem>>, vector<4x8x1xf32>,
      %cst_39 = arith.constant 0.000000e+00 : f32
      %38 = vector.broadcast %cst_39 : f32 to vector<4x8x1xf32>
      %c0_40 = arith.constant 0 : index
      %c0_41 = arith.constant 0 : index
      %c0_42 = arith.constant 0 : index
      %39 = vector.load %arg10[%c0_40, %c0_41, %c0_42] : memref<4x8x1xf32, #tpu.memory_space<vmem>>, vector<4x8x1xf32>
      tpu.vector_store %arg10[%c0_40, %c0_41, %c0_42], %38 {strides = array<i32>} : memref<4x8x1xf32, #tpu.memory_space<vmem>>, vector<4x8x1xf32>,
      %cst_43 = arith.constant 0.000000e+00 : f32
      %40 = vector.broadcast %cst_43 : f32 to vector<4x8x8xf32>
      %c0_44 = arith.constant 0 : index
      %c0_45 = arith.constant 0 : index
      %c0_46 = arith.constant 0 : index
      %41 = vector.load %arg11[%c0_44, %c0_45, %c0_46] : memref<4x8x8xf32, #tpu.memory_space<vmem>>, vector<4x8x8xf32>
      tpu.vector_store %arg11[%c0_44, %c0_45, %c0_46], %40 {strides = array<i32>} : memref<4x8x8xf32, #tpu.memory_space<vmem>>, vector<4x8x8xf32>,
    } else {
    }
    %c0 = arith.constant 0 : index
    %c0_1 = arith.constant 0 : index
    %c0_2 = arith.constant 0 : index
    %c0_3 = arith.constant 0 : index
    %3 = vector.load %arg3[%c0, %c0_1, %c0_2, %c0_3] : memref<1x4x8x8xbf16, #tpu.memory_space<vmem>>, vector<1x4x8x8xbf16>
    %4 = vector.shape_cast %3 : vector<1x4x8x8xbf16> to vector<4x8x8xbf16>
    %c0_4 = arith.constant 0 : index
    %c0_5 = arith.constant 0 : index
    %c0_6 = arith.constant 0 : index
    %c0_7 = arith.constant 0 : index
    %5 = vector.load %arg4[%c0_4, %c0_5, %c0_6, %c0_7] : memref<1x4x8x8xbf16, #tpu.memory_space<vmem>>, vector<1x4x8x8xbf16>
    %6 = vector.shape_cast %5 : vector<1x4x8x8xbf16> to vector<4x8x8xbf16>
    %c0_8 = arith.constant 0 : index
    %c0_9 = arith.constant 0 : index
    %c0_10 = arith.constant 0 : index
    %c0_11 = arith.constant 0 : index
    %7 = vector.load %arg5[%c0_8, %c0_9, %c0_10, %c0_11] : memref<1x4x8x8xbf16, #tpu.memory_space<vmem>>, vector<1x4x8x8xbf16>
    %8 = vector.shape_cast %7 : vector<1x4x8x8xbf16> to vector<4x8x8xbf16>
    "tpu.trace_start"() <{level = 10 : i32, message = "hqd,hkd->hqk"}> : () -> ()
    %cst = arith.constant dense<0.000000e+00> : vector<4x8x8xf32>
    %9 = tpu.matmul %4, %6, %cst {dimension_numbers = #tpu.dot_dimension_numbers<[2], [2], [1], [1], [0, 0, 0, 1, 1, 1], [0], [0]>} : vector<4x8x8xbf16>, vector<4x8x8xbf16>, vector<4x8x8xf32> -> vector<4x8x8xf32>
    "tpu.trace_stop"() : () -> ()
    %c0_12 = arith.constant 0 : index
    %c0_13 = arith.constant 0 : index
    %c0_14 = arith.constant 0 : index
    %10 = vector.load %arg9[%c0_12, %c0_13, %c0_14] : memref<4x8x1xf32, #tpu.memory_space<vmem>>, vector<4x8x1xf32>
    %cst_15 = arith.constant dense<0xFF800000> : vector<4x8xf32>
    %11 = vector.multi_reduction <maximumf>, %9, %cst_15 [2] : vector<4x8x8xf32> to vector<4x8xf32>
    %12 = vector.shape_cast %11 : vector<4x8xf32> to vector<4x8x1xf32>
    %13 = arith.maximumf %10, %12 : vector<4x8x1xf32>
    %14 = arith.subf %10, %13 : vector<4x8x1xf32>
    %15 = math.exp %14 : vector<4x8x1xf32>
    %16 = vector.broadcast %13 : vector<4x8x1xf32> to vector<4x8x8xf32>
    %17 = arith.subf %9, %16 : vector<4x8x8xf32>
    %18 = math.exp %17 : vector<4x8x8xf32>
    %c0_16 = arith.constant 0 : index
    %c0_17 = arith.constant 0 : index
    %c0_18 = arith.constant 0 : index
    %19 = vector.load %arg10[%c0_16, %c0_17, %c0_18] : memref<4x8x1xf32, #tpu.memory_space<vmem>>, vector<4x8x1xf32>
    %20 = arith.mulf %15, %19 : vector<4x8x1xf32>
    %cst_19 = arith.constant dense<0.000000e+00> : vector<4x8xf32>
    %21 = vector.multi_reduction <add>, %18, %cst_19 [2] : vector<4x8x8xf32> to vector<4x8xf32>
    %22 = vector.shape_cast %21 : vector<4x8xf32> to vector<4x8x1xf32>
    %23 = arith.addf %20, %22 : vector<4x8x1xf32>
    %c0_20 = arith.constant 0 : index
    %c0_21 = arith.constant 0 : index
    %c0_22 = arith.constant 0 : index
    %24 = vector.load %arg10[%c0_20, %c0_21, %c0_22] : memref<4x8x1xf32, #tpu.memory_space<vmem>>, vector<4x8x1xf32>
    tpu.vector_store %arg10[%c0_20, %c0_21, %c0_22], %23 {strides = array<i32>} : memref<4x8x1xf32, #tpu.memory_space<vmem>>, vector<4x8x1xf32>,
    %c0_23 = arith.constant 0 : index
    %c0_24 = arith.constant 0 : index
    %c0_25 = arith.constant 0 : index
    %25 = vector.load %arg11[%c0_23, %c0_24, %c0_25] : memref<4x8x8xf32, #tpu.memory_space<vmem>>, vector<4x8x8xf32>
    %26 = vector.broadcast %15 : vector<4x8x1xf32> to vector<4x8x8xf32>
    %27 = arith.mulf %26, %25 : vector<4x8x8xf32>
    %28 = arith.truncf %18 : vector<4x8x8xf32> to vector<4x8x8xbf16>
    "tpu.trace_start"() <{level = 10 : i32, message = "hqk,hkd->hqd"}> : () -> ()
    %cst_26 = arith.constant dense<0.000000e+00> : vector<4x8x8xf32>
    %29 = tpu.matmul %28, %8, %cst_26 {dimension_numbers = #tpu.dot_dimension_numbers<[2], [1], [1], [2], [0, 0, 0, 1, 1, 2], [0], [0]>} : vector<4x8x8xbf16>, vector<4x8x8xbf16>, vector<4x8x8xf32> -> vector<4x8x8xf32>
    "tpu.trace_stop"() : () -> ()
    %30 = arith.addf %27, %29 : vector<4x8x8xf32>
    %c0_27 = arith.constant 0 : index
    %c0_28 = arith.constant 0 : index
    %c0_29 = arith.constant 0 : index
    %31 = vector.load %arg11[%c0_27, %c0_28, %c0_29] : memref<4x8x8xf32, #tpu.memory_space<vmem>>, vector<4x8x8xf32>
    tpu.vector_store %arg11[%c0_27, %c0_28, %c0_29], %30 {strides = array<i32>} : memref<4x8x8xf32, #tpu.memory_space<vmem>>, vector<4x8x8xf32>,
    %c0_30 = arith.constant 0 : index
    %c0_31 = arith.constant 0 : index
    %c0_32 = arith.constant 0 : index
    %32 = vector.load %arg9[%c0_30, %c0_31, %c0_32] : memref<4x8x1xf32, #tpu.memory_space<vmem>>, vector<4x8x1xf32>
    tpu.vector_store %arg9[%c0_30, %c0_31, %c0_32], %13 {strides = array<i32>} : memref<4x8x1xf32, #tpu.memory_space<vmem>>, vector<4x8x1xf32>,
    %c0_i32_33 = arith.constant 0 : i32
    %33 = arith.cmpi eq, %arg2, %c0_i32_33 : i32
    %34 = arith.extui %33 : i1 to i32
    %c0_i32_34 = arith.constant 0 : i32
    %35 = arith.cmpi ne, %34, %c0_i32_34 : i32
    scf.if %35 {
      %c0_35 = arith.constant 0 : index
      %c0_36 = arith.constant 0 : index
      %c0_37 = arith.constant 0 : index
      %36 = vector.load %arg11[%c0_35, %c0_36, %c0_37] : memref<4x8x8xf32, #tpu.memory_space<vmem>>, vector<4x8x8xf32>
      %c0_38 = arith.constant 0 : index
      %c0_39 = arith.constant 0 : index
      %c0_40 = arith.constant 0 : index
      %37 = vector.load %arg10[%c0_38, %c0_39, %c0_40] : memref<4x8x1xf32, #tpu.memory_space<vmem>>, vector<4x8x1xf32>
      %38 = tpu.reciprocal %37 {approx = true} : vector<4x8x1xf32> -> vector<4x8x1xf32>
      %39 = vector.broadcast %38 : vector<4x8x1xf32> to vector<4x8x8xf32>
      %40 = arith.mulf %36, %39 : vector<4x8x8xf32>
      %41 = arith.truncf %40 : vector<4x8x8xf32> to vector<4x8x8xbf16>
      %42 = tpu.transpose %41, [1, 0, 2] : vector<4x8x8xbf16> -> vector<8x4x8xbf16>
      %43 = vector.shape_cast %42 : vector<8x4x8xbf16> to vector<8x32xbf16>
      %c0_41 = arith.constant 0 : index
      %c0_42 = arith.constant 0 : index
      %44 = vector.load %arg6[%c0_41, %c0_42] : memref<32x32xbf16, #tpu.memory_space<vmem>>, vector<32x32xbf16>
      %cst_43 = arith.constant dense<0.000000e+00> : vector<8x32xf32>
      %45 = tpu.matmul %43, %44, %cst_43 {dimension_numbers = #tpu.dot_dimension_numbers<[1], [0], [0], [1], [0, 0, 1, 1], [], []>} : vector<8x32xbf16>, vector<32x32xbf16>, vector<8x32xf32> -> vector<8x32xf32>
      %c0_44 = arith.constant 0 : index
      %c0_45 = arith.constant 0 : index
      %46 = vector.load %arg7[%c0_44, %c0_45] : memref<1x32xf32, #tpu.memory_space<vmem>>, vector<1x32xf32>
      %47 = vector.broadcast %46 : vector<1x32xf32> to vector<8x32xf32>
      %48 = arith.addf %45, %47 : vector<8x32xf32>
      %c0_46 = arith.constant 0 : index
      %c0_47 = arith.constant 0 : index
      %c0_48 = arith.constant 0 : index
      %49 = vector.load %arg8[%c0_46, %c0_47, %c0_48] : memref<1x8x32xf32, #tpu.memory_space<vmem>>, vector<1x8x32xf32>
      %50 = vector.shape_cast %49 : vector<1x8x32xf32> to vector<8x32xf32>
      %51 = vector.shape_cast %48 : vector<8x32xf32> to vector<1x8x32xf32>
      tpu.vector_store %arg8[%c0_46, %c0_47, %c0_48], %51 {strides = array<i32>} : memref<1x8x32xf32, #tpu.memory_space<vmem>>, vector<1x8x32xf32>,
    } else {
    }
    return
  }
  func.func @transform_0(%arg0: i32, %arg1: i32, %arg2: i32) -> (i32, i32, i32, i32) {
    %c0_i32 = arith.constant 0 : i32
    %c0_i32_0 = arith.constant 0 : i32
    %c0_i32_1 = arith.constant 0 : i32
    return %arg0, %c0_i32, %arg1, %c0_i32_0 : i32, i32, i32, i32
  }
  func.func @transform_1(%arg0: i32, %arg1: i32, %arg2: i32) -> (i32, i32, i32, i32) {
    %c0_i32 = arith.constant 0 : i32
    %c0_i32_0 = arith.constant 0 : i32
    %c0_i32_1 = arith.constant 0 : i32
    return %arg0, %c0_i32, %arg2, %c0_i32_0 : i32, i32, i32, i32
  }
  func.func @transform_2(%arg0: i32, %arg1: i32, %arg2: i32) -> (i32, i32, i32, i32) {
    %c0_i32 = arith.constant 0 : i32
    %c0_i32_0 = arith.constant 0 : i32
    %c0_i32_1 = arith.constant 0 : i32
    return %arg0, %c0_i32, %arg2, %c0_i32_0 : i32, i32, i32, i32
  }
  func.func @transform_3(%arg0: i32, %arg1: i32, %arg2: i32) -> (i32, i32) {
    %c0_i32 = arith.constant 0 : i32
    %c0_i32_0 = arith.constant 0 : i32
    %c0_i32_1 = arith.constant 0 : i32
    return %c0_i32, %c0_i32_0 : i32, i32
  }
  func.func @transform_4(%arg0: i32, %arg1: i32, %arg2: i32) -> (i32, i32) {
    %c0_i32 = arith.constant 0 : i32
    %c0_i32_0 = arith.constant 0 : i32
    %c0_i32_1 = arith.constant 0 : i32
    return %c0_i32, %c0_i32_0 : i32, i32
  }
  func.func @transform_5(%arg0: i32, %arg1: i32, %arg2: i32) -> (i32, i32, i32) {
    %c0_i32 = arith.constant 0 : i32
    %c0_i32_0 = arith.constant 0 : i32
    return %arg0, %arg1, %c0_i32 : i32, i32, i32
  }
}

</mosaic_0001>

<bundles_post_ra>
// kernel: multi_head_attention.4
= control target key start
LH: loop header
LB: loop body
LE: loop exit
PB: predicated region body
PF: predicated region fallthrough
CT: control target
= control target key end

     0   :  { %s639_s12 = smov 0   ;;  %s641_s13 = smov 0   ;;  %s685_s0 = inlined_call_operand.vmem [shape: bf16[2,8,32], index: 0, kind: input, shape index: {}]   ;;  %s686_s1 = inlined_call_operand.vmem [shape: bf16[32,32], index: 1, kind: input, shape index: {}]   ;;  %s687_s2 = inlined_call_operand.vmem [shape: f32[1,32], index: 2, kind: input, shape index: {}]   ;;  %s688_s3 = inlined_call_operand.vmem [shape: bf16[2,4,8,8], index: 3, kind: output, shape index: {}]  }
   0x1   :  { %s643_s14 = smov 0  }
   0x2 LB: > { %s25_s15 = sadd.s32 1, %s605_s13  ;;  %p531_p0 = scmp.ge.s32.totalorder %s609_s14, 1  ;;  %s609_s14 = sphi %s643_s14, %s13_s14   ;;  %s605_s13 = sphi %s641_s13, %s690_s13   ;;  %s601_s12 = sphi %s639_s12, %s689_s12  }
   0x3   : > { %p27_p1 = scmp.ge.s32.totalorder %s25_s15, 2  ;;  %p155_p2 = scmp.lt.s32.totalorder %s609_s14, 3 }
   0x5   : > { %s692_s15 = smov (%p27_p1, %s25_s15), 0  ;;  %p156_p3 = pnand %p531_p0, %p155_p2 }
   0x6   : > { %v585_v0 = vld [vmem:[%s686_s1] sm:$0xff] (!%p156_p3)   ;;  %v611_v1 = vmov (!%p156_p3), 0.0   ;;  %v586_v2 = vld [vmem:[%s686_s1 + $0x8] sm:$0xff] (!%p156_p3)   ;;  %vm612_vm0 = vmmov (!%p156_p3), 0   ;;  %p184_p4 = scmp.lt.s32.totalorder (!%p156_p3), %s601_s12, 1  ;;  %vm224_vm1 = vcmask (!%p156_p3), 261120   ;;  %v280_v14 = vlaneseq (!%p156_p3) }
   0x7   : > { %159 = sbr.rel (%p156_p3) target bundleno = 383 (0x17f), region = 32  ;;  %545 = vmatprep.subr.bf16.mxu0 (!%p156_p3), %v611_v1  ;;  %549 = vmatprep.mubr.msk.bf16.mxu0 (!%p156_p3), %vm612_vm0, %v611_v1  ;;  %v535_v4 = vld [vmem:[%s687_s2] ss:$0 sm:$0xff] (!%p156_p3)  ;;  %s613_s26 = smov (!%p156_p3), 104   ;;  %v616_v12 = vmov (!%p156_p3), 1983009808  }
   0x8   : > { %546 = vmatpush3.bf16.msra.mxu0 (!%p156_p3), %v585_v0  ;;  %s614_s27 = smov (!%p156_p3), 120   ;;  %s615_s28 = smov (!%p156_p3), 112   ;;  %v278_v13 = vunpack.c.l.s4 (!%p156_p3), %v616_v12  ;;  %v617_v15 = vmov (!%p156_p3), 1934713408   ;;  %v281_v18 = vshrl.u32 (!%p156_p3), %v280_v14, 7  ;;  %v618_v35 = vmov (!%p156_p3), 0  }
   0x9   : > { %547 = vmatprep.subr.bf16.mxu0 (!%p156_p3), %v611_v1  ;;  %v295_v16 = vunpack.c.l.s4 (!%p156_p3), %v617_v15  ;;  %vm442_vm2 = vcmask (!%p156_p3), 60416  }
   0xa   : > { %v279_v17 = vunpack.c.0.s8 (!%p156_p3), %v278_v13 }
   0xb   : > { %v296_v19 = vunpack.c.0.s8 (!%p156_p3), %v295_v16 }
   0xc   : > { %548 = vmatpush3.bf16.msra.mxu0 (!%p156_p3), %v586_v2  ;;  %v282_v20 = vsub.s32 (!%p156_p3), %v279_v17, %v281_v18 }
   0xd   : > { %v299_v24 = vsub.s32 (!%p156_p3), %v296_v19, %v281_v18 }
   0xe   : > { %s694_s12 = smov (!%p184_p4, %s601_s12), 1 }
   0xf   : > { %s532_s20 = sshll.u32 %s694_s12, 2  ;;  %s541_s29 = sshll.u32 %s694_s12, 4 }
  0x10   : > { %s190_s23 = scalar_lea.vmem %s685_s0, %s532_s20  ;;  %s198_s5 = scalar_lea.vmem %s688_s3, %s541_s29 }
  0x11   : > { %v200_v3 = vld [vmem:[%s190_s23] sm:$0xf] }
  0x12   : > { %550 = vmatmul.mubr.msk.bf16.vlgmr.msra.gmra.mrb[0].mxu0 %vm224_vm1, %v200_v3 }
  0xe5   : > { %v262_v5 = vpop.f32.mrb[0].mxu0 }
  0xe6   : > { %v263_v6 = vadd.f32 %v535_v4, %v262_v5  ;;  %v551_v7 = vpop.f32.mrb[1].mxu0 }
  0xe7   : > { %v265_v8 = vpop.f32.mrb[2].mxu0 }
  0xe8   : > { %v268_v9 = vmul.f32 0.35355338, %v263_v6  ;;  %v552_v10 = vpop.f32.mrb[3].mxu0 }
  0xea   : > { %v269_v11 = vpack.c.bf16 %v268_v9, %v268_v9 }
  0xec   : > { %275 = vrot.lane.b32.xlu1 %v269_v11, %s613_s26  ;;  %271 = vrot.lane.b32.xlu0 %v269_v11, %s614_s27  ;;  %v283_v31 = vrot.slane %v269_v11, %v282_v20 }
  0xf0   : > { %273 = vrot.lane.b32.xlu0 %v269_v11, %s615_s28 }
 0x15e   : > { %v276_v21 = vpop.permute.xlu1 %275  ;;  %v272_v22 = vpop.permute.xlu0 %271 }
 0x15f   : > { %v325_v23 = vrot.slane %v276_v21, %v282_v20  ;;  %v317_v25 = vrot.slane %v272_v22, %v282_v20 }
 0x161   : > { %v326_v26 = vcombine.low %v317_v25, %v325_v23  ;;  %v327_v27 = vcombine.high %v317_v25, %v325_v23 }
 0x162   : > { %v274_v28 = vpop.permute.xlu0 %273 }
 0x163   : > { %v334_v29 = vrot.slane %v326_v26, %v299_v24  ;;  %v291_v30 = vrot.slane %v274_v28, %v282_v20  ;;  %v341_v32 = vrot.slane %v327_v27, %v299_v24 }
 0x165   : > { %v292_v33 = vcombine.low %v283_v31, %v291_v30  ;;  %v293_v34 = vcombine.high %v283_v31, %v291_v30  ;;  %v342_v36 = vcombine.high %v334_v29, %v618_v35  ;;  %v343_v39 = vcombine.high %v341_v32, %v618_v35 }
 0x166   : > { %v349_v40 = vshrl.u32 %v334_v29, 16  ;;  %v365_v46 = vshrl.u32 %v341_v32, 16 }
 0x167   : > { %v300_v37 = vrot.slane %v292_v33, %v299_v24  ;;  %v307_v38 = vrot.slane %v293_v34, %v299_v24  ;;  %v357_v45 = vshrl.u32 %v342_v36, 16  ;;  %v373_v53 = vshrl.u32 %v343_v39, 16 }
 0x169   : > { %v308_v41 = vcombine.high %v300_v37, %v618_v35  ;;  %v309_v42 = vcombine.high %v307_v38, %v618_v35  ;;  %v346_v43 = vpack.i.b16 %v334_v29, %v300_v37  ;;  %v348_v44 = vshrl.u32 %v300_v37, 16 }
 0x16a   : > { %v362_v47 = vpack.i.b16 %v341_v32, %v307_v38  ;;  %v364_v48 = vshrl.u32 %v307_v38, 16 }
 0x16b   : > { %v350_v49 = vpack.i.b16 %v349_v40, %v348_v44  ;;  %v354_v50 = vpack.i.b16 %v342_v36, %v308_v41  ;;  %v356_v51 = vshrl.u32 %v308_v41, 16  ;;  %v370_v52 = vpack.i.b16 %v343_v39, %v309_v42 }
 0x16c   : > { %v366_v54 = vpack.i.b16 %v365_v46, %v364_v48  ;;  %v372_v55 = vshrl.u32 %v309_v42, 16  ;;  %v376_v56 = vcombine.low %v346_v43, %v362_v47 }
 0x16d   : > { %v358_v57 = vpack.i.b16 %v357_v45, %v356_v51  ;;  %v384_v58 = vcombine.low %v354_v50, %v370_v52 }
 0x16e   : > { %v374_v59 = vpack.i.b16 %v373_v53, %v372_v55  ;;  %v401_v60 = vcombine.low %v350_v49, %v366_v54  ;;  %v383_v61 = vrot.slane %v376_v56, %v282_v20 }
 0x16f   : > { %v391_v62 = vrot.slane %v384_v58, %v282_v20 }
 0x170   : > { %v409_v63 = vcombine.low %v358_v57, %v374_v59  ;;  %v408_v1 = vrot.slane %v401_v60, %v282_v20 }
 0x171   : > { %v392_v0 = vcombine.low %v383_v61, %v391_v62 }
 0x172   : > { %v416_v2 = vrot.slane %v409_v63, %v282_v20 }
 0x173   : > { %v399_v3 = vrot.slane %v392_v0, %v299_v24 }
 0x174   : > { %v417_v4 = vcombine.low %v408_v1, %v416_v2 }
 0x175   : > { %v400_v5 = vcombine.high %v399_v3, %v618_v35  ;;  %v430_v9 = vshrl.u32 %v399_v3, 16 }
 0x176   : > { %v424_v6 = vrot.slane %v417_v4, %v299_v24 }
 0x177   : > { %v438_v13 = vshrl.u32 %v400_v5, 16 }
 0x178   : > { %v425_v7 = vcombine.high %v424_v6, %v618_v35  ;;  %v428_v8 = vpack.i.b16 %v424_v6, %v399_v3  ;;  %v431_v10 = vshrl.u32 %v424_v6, 16 }
 0x17a   : > { %v432_v11 = vpack.i.b16 %v431_v10, %v430_v9  ;;  %v436_v12 = vpack.i.b16 %v425_v7, %v400_v5  ;;  %v439_v14 = vshrl.u32 %v425_v7, 16  ;;  %443 = vst.msk [vmem:[%s198_s5] sm:$0xf] %vm442_vm2, %v428_v8 }
 0x17c   : > { %v440_v15 = vpack.i.b16 %v439_v14, %v438_v13  ;;  %444 = vst.msk [vmem:[%s198_s5 + $0x4] sm:$0xf] %vm442_vm2, %v432_v11  ;;  %445 = vst.msk [vmem:[%s198_s5 + $0x8] sm:$0xf] %vm442_vm2, %v436_v12 }
 0x17e   : > { %446 = vst.msk [vmem:[%s198_s5 + $0xc] sm:$0xf] %vm442_vm2, %v440_v15 }
 0x17f PF: > { %s13_s14 = sadd.s32 1, %s609_s14   ;;  %s689_s12 = smov %s605_s13 }
 0x180   : > { %p10_p5 = scmp.ge.s32.totalorder %s13_s14, 4   ;;  %s690_s13 = smov %s692_s15 }
 0x182   :  { %12 = sbr.rel (!%p10_p5) target bundleno = 2 (0x2), region = 62 }

// kernel: multi_head_attention.5
= control target key start
LH: loop header
LB: loop body
LE: loop exit
PB: predicated region body
PF: predicated region fallthrough
CT: control target
= control target key end

     0   :  { %s638_s12 = smov 0   ;;  %s640_s13 = smov 0   ;;  %s684_s0 = inlined_call_operand.vmem [shape: bf16[2,8,32], index: 0, kind: input, shape index: {}]   ;;  %s685_s1 = inlined_call_operand.vmem [shape: bf16[32,32], index: 1, kind: input, shape index: {}]   ;;  %s686_s2 = inlined_call_operand.vmem [shape: f32[1,32], index: 2, kind: input, shape index: {}]   ;;  %s687_s3 = inlined_call_operand.vmem [shape: bf16[2,4,8,8], index: 3, kind: output, shape index: {}]  }
   0x1   :  { %s642_s14 = smov 0  }
   0x2 LB: > { %s25_s15 = sadd.s32 1, %s604_s13  ;;  %p530_p0 = scmp.ge.s32.totalorder %s608_s14, 1  ;;  %s608_s14 = sphi %s642_s14, %s13_s14   ;;  %s604_s13 = sphi %s640_s13, %s689_s13   ;;  %s600_s12 = sphi %s638_s12, %s688_s12  }
   0x3   : > { %p27_p1 = scmp.ge.s32.totalorder %s25_s15, 2  ;;  %p155_p2 = scmp.lt.s32.totalorder %s608_s14, 3 }
   0x5   : > { %s691_s15 = smov (%p27_p1, %s25_s15), 0  ;;  %p156_p3 = pnand %p530_p0, %p155_p2 }
   0x6   : > { %v584_v0 = vld [vmem:[%s685_s1] sm:$0xff] (!%p156_p3)   ;;  %v610_v1 = vmov (!%p156_p3), 0.0   ;;  %v585_v2 = vld [vmem:[%s685_s1 + $0x8] sm:$0xff] (!%p156_p3)   ;;  %vm611_vm0 = vmmov (!%p156_p3), 0   ;;  %p184_p4 = scmp.lt.s32.totalorder (!%p156_p3), %s600_s12, 1  ;;  %vm224_vm1 = vcmask (!%p156_p3), 261120   ;;  %v279_v13 = vlaneseq (!%p156_p3) }
   0x7   : > { %159 = sbr.rel (%p156_p3) target bundleno = 381 (0x17d), region = 32  ;;  %544 = vmatprep.subr.bf16.mxu0 (!%p156_p3), %v610_v1  ;;  %548 = vmatprep.mubr.msk.bf16.mxu0 (!%p156_p3), %vm611_vm0, %v610_v1  ;;  %v534_v4 = vld [vmem:[%s686_s2] ss:$0 sm:$0xff] (!%p156_p3)  ;;  %s612_s26 = smov (!%p156_p3), 104   ;;  %v615_v11 = vmov (!%p156_p3), 1983009808  }
   0x8   : > { %545 = vmatpush3.bf16.msra.mxu0 (!%p156_p3), %v584_v0  ;;  %s613_s27 = smov (!%p156_p3), 120   ;;  %s614_s28 = smov (!%p156_p3), 112   ;;  %v277_v12 = vunpack.c.l.s4 (!%p156_p3), %v615_v11  ;;  %v616_v14 = vmov (!%p156_p3), 1934713408   ;;  %v280_v17 = vshrl.u32 (!%p156_p3), %v279_v13, 7  ;;  %v617_v34 = vmov (!%p156_p3), 0  }
   0x9   : > { %546 = vmatprep.subr.bf16.mxu0 (!%p156_p3), %v610_v1  ;;  %v294_v15 = vunpack.c.l.s4 (!%p156_p3), %v616_v14  ;;  %vm441_vm2 = vcmask (!%p156_p3), 60416  }
   0xa   : > { %v278_v16 = vunpack.c.0.s8 (!%p156_p3), %v277_v12 }
   0xb   : > { %v295_v18 = vunpack.c.0.s8 (!%p156_p3), %v294_v15 }
   0xc   : > { %547 = vmatpush3.bf16.msra.mxu0 (!%p156_p3), %v585_v2  ;;  %v281_v19 = vsub.s32 (!%p156_p3), %v278_v16, %v280_v17 }
   0xd   : > { %v298_v23 = vsub.s32 (!%p156_p3), %v295_v18, %v280_v17 }
   0xe   : > { %s693_s12 = smov (!%p184_p4, %s600_s12), 1 }
   0xf   : > { %s531_s20 = sshll.u32 %s693_s12, 2  ;;  %s540_s29 = sshll.u32 %s693_s12, 4 }
  0x10   : > { %s190_s23 = scalar_lea.vmem %s684_s0, %s531_s20  ;;  %s198_s5 = scalar_lea.vmem %s687_s3, %s540_s29 }
  0x11   : > { %v200_v3 = vld [vmem:[%s190_s23] sm:$0xf] }
  0x12   : > { %549 = vmatmul.mubr.msk.bf16.vlgmr.msra.gmra.mrb[0].mxu0 %vm224_vm1, %v200_v3 }
  0xe5   : > { %v262_v5 = vpop.f32.mrb[0].mxu0 }
  0xe6   : > { %v263_v6 = vadd.f32 %v534_v4, %v262_v5  ;;  %v550_v7 = vpop.f32.mrb[1].mxu0 }
  0xe7   : > { %v265_v8 = vpop.f32.mrb[2].mxu0 }
  0xe8   : > { %v268_v9 = vpack.c.bf16 %v263_v6, %v263_v6  ;;  %v551_v10 = vpop.f32.mrb[3].mxu0 }
  0xea   : > { %274 = vrot.lane.b32.xlu1 %v268_v9, %s612_s26  ;;  %270 = vrot.lane.b32.xlu0 %v268_v9, %s613_s27  ;;  %v282_v30 = vrot.slane %v268_v9, %v281_v19 }
  0xee   : > { %272 = vrot.lane.b32.xlu0 %v268_v9, %s614_s28 }
 0x15c   : > { %v275_v20 = vpop.permute.xlu1 %274  ;;  %v271_v21 = vpop.permute.xlu0 %270 }
 0x15d   : > { %v324_v22 = vrot.slane %v275_v20, %v281_v19  ;;  %v316_v24 = vrot.slane %v271_v21, %v281_v19 }
 0x15f   : > { %v325_v25 = vcombine.low %v316_v24, %v324_v22  ;;  %v326_v26 = vcombine.high %v316_v24, %v324_v22 }
 0x160   : > { %v273_v27 = vpop.permute.xlu0 %272 }
 0x161   : > { %v333_v28 = vrot.slane %v325_v25, %v298_v23  ;;  %v290_v29 = vrot.slane %v273_v27, %v281_v19  ;;  %v340_v31 = vrot.slane %v326_v26, %v298_v23 }
 0x163   : > { %v291_v32 = vcombine.low %v282_v30, %v290_v29  ;;  %v292_v33 = vcombine.high %v282_v30, %v290_v29  ;;  %v341_v35 = vcombine.high %v333_v28, %v617_v34  ;;  %v342_v38 = vcombine.high %v340_v31, %v617_v34 }
 0x164   : > { %v348_v39 = vshrl.u32 %v333_v28, 16  ;;  %v364_v45 = vshrl.u32 %v340_v31, 16 }
 0x165   : > { %v299_v36 = vrot.slane %v291_v32, %v298_v23  ;;  %v306_v37 = vrot.slane %v292_v33, %v298_v23  ;;  %v356_v44 = vshrl.u32 %v341_v35, 16  ;;  %v372_v52 = vshrl.u32 %v342_v38, 16 }
 0x167   : > { %v307_v40 = vcombine.high %v299_v36, %v617_v34  ;;  %v308_v41 = vcombine.high %v306_v37, %v617_v34  ;;  %v345_v42 = vpack.i.b16 %v333_v28, %v299_v36  ;;  %v347_v43 = vshrl.u32 %v299_v36, 16 }
 0x168   : > { %v361_v46 = vpack.i.b16 %v340_v31, %v306_v37  ;;  %v363_v47 = vshrl.u32 %v306_v37, 16 }
 0x169   : > { %v349_v48 = vpack.i.b16 %v348_v39, %v347_v43  ;;  %v353_v49 = vpack.i.b16 %v341_v35, %v307_v40  ;;  %v355_v50 = vshrl.u32 %v307_v40, 16  ;;  %v369_v51 = vpack.i.b16 %v342_v38, %v308_v41 }
 0x16a   : > { %v365_v53 = vpack.i.b16 %v364_v45, %v363_v47  ;;  %v371_v54 = vshrl.u32 %v308_v41, 16  ;;  %v375_v55 = vcombine.low %v345_v42, %v361_v46 }
 0x16b   : > { %v357_v56 = vpack.i.b16 %v356_v44, %v355_v50  ;;  %v383_v57 = vcombine.low %v353_v49, %v369_v51 }
 0x16c   : > { %v373_v58 = vpack.i.b16 %v372_v52, %v371_v54  ;;  %v400_v59 = vcombine.low %v349_v48, %v365_v53  ;;  %v382_v60 = vrot.slane %v375_v55, %v281_v19 }
 0x16d   : > { %v390_v61 = vrot.slane %v383_v57, %v281_v19 }
 0x16e   : > { %v408_v62 = vcombine.low %v357_v56, %v373_v58  ;;  %v407_v0 = vrot.slane %v400_v59, %v281_v19 }
 0x16f   : > { %v391_v63 = vcombine.low %v382_v60, %v390_v61 }
 0x170   : > { %v415_v1 = vrot.slane %v408_v62, %v281_v19 }
 0x171   : > { %v398_v2 = vrot.slane %v391_v63, %v298_v23 }
 0x172   : > { %v416_v3 = vcombine.low %v407_v0, %v415_v1 }
 0x173   : > { %v399_v4 = vcombine.high %v398_v2, %v617_v34  ;;  %v429_v8 = vshrl.u32 %v398_v2, 16 }
 0x174   : > { %v423_v5 = vrot.slane %v416_v3, %v298_v23 }
 0x175   : > { %v437_v12 = vshrl.u32 %v399_v4, 16 }
 0x176   : > { %v424_v6 = vcombine.high %v423_v5, %v617_v34  ;;  %v427_v7 = vpack.i.b16 %v423_v5, %v398_v2  ;;  %v430_v9 = vshrl.u32 %v423_v5, 16 }
 0x178   : > { %v431_v10 = vpack.i.b16 %v430_v9, %v429_v8  ;;  %v435_v11 = vpack.i.b16 %v424_v6, %v399_v4  ;;  %v438_v13 = vshrl.u32 %v424_v6, 16  ;;  %442 = vst.msk [vmem:[%s198_s5] sm:$0xf] %vm441_vm2, %v427_v7 }
 0x17a   : > { %v439_v14 = vpack.i.b16 %v438_v13, %v437_v12  ;;  %443 = vst.msk [vmem:[%s198_s5 + $0x4] sm:$0xf] %vm441_vm2, %v431_v10  ;;  %444 = vst.msk [vmem:[%s198_s5 + $0x8] sm:$0xf] %vm441_vm2, %v435_v11 }
 0x17c   : > { %445 = vst.msk [vmem:[%s198_s5 + $0xc] sm:$0xf] %vm441_vm2, %v439_v14 }
 0x17d PF: > { %s13_s14 = sadd.s32 1, %s608_s14   ;;  %s688_s12 = smov %s604_s13 }
 0x17e   : > { %p10_p5 = scmp.ge.s32.totalorder %s13_s14, 4   ;;  %s689_s13 = smov %s691_s15 }
 0x180   :  { %12 = sbr.rel (!%p10_p5) target bundleno = 2 (0x2), region = 62 }

// kernel: multi_head_attention.7
= control target key start
LH: loop header
LB: loop body
LE: loop exit
PB: predicated region body
PF: predicated region fallthrough
CT: control target
= control target key end

     0   :  { %10 = vsyncpa [#allocation6], 0  ;;  %s1871_s0 = inlined_call_operand.vmem [shape: bf16[2,4,8,8], index: 0, kind: input, shape index: {}]   ;;  %s1872_s1 = inlined_call_operand.vmem [shape: bf16[2,4,8,8], index: 1, kind: input, shape index: {}]   ;;  %s1873_s2 = inlined_call_operand.vmem [shape: bf16[2,4,8,8], index: 2, kind: input, shape index: {}]   ;;  %s1874_s3 = inlined_call_operand.vmem [shape: bf16[32,32], index: 3, kind: input, shape index: {}]   ;;  %s1875_s4 = inlined_call_operand.vmem [shape: f32[1,32], index: 4, kind: input, shape index: {}]   ;;  %s1876_s5 = inlined_call_operand.hbm [shape: f32[2,8,32], index: 5, kind: output, shape index: {}]  }
   0x1   :  { %12 = vsyncpa [#allocation6 + $0x1], 0  ;;  %s1584_s18 = smov 0   ;;  %s1586_s19 = smov 0  }
   0x2   :  { %s1588_s20 = smov 0   ;;  %s1590_s21 = smov 0  }
   0x3   :  { %s1592_s22 = smov 0   ;;  %s1594_s23 = smov 0  }
   0x4 LB: > { %s1266_s24 = sadd.s32 4294967295, %s1542_s23   ;;  %s1267_s25 = sadd.s32 4294967294, %s1542_s23   ;;  %s1542_s23 = sphi %s1594_s23, %s18_s23   ;;  %s1538_s22 = sphi %s1592_s22, %s1883_s22   ;;  %s1534_s21 = sphi %s1590_s21, %s1882_s21   ;;  %s1530_s20 = sphi %s1588_s20, %s1881_s20   ;;  %s1526_s19 = sphi %s1586_s19, %s1880_s19   ;;  %s1522_s18 = sphi %s1584_s18, %s1879_s18  }
   0x5   : > { %s37_s26 = sadd.s32 1, %s1538_s22  ;;  %s172_s27 = sadd.s32 1, %s1530_s20 }
   0x6   : > { %p39_p0 = scmp.ge.s32.totalorder %s37_s26, 2  ;;  %p182_p1 = scmp.ne.s32.totalorder %s1530_s20, %s1526_s19 }
   0x7   : > { %p183_p2 = scmp.eq.s32.totalorder %s1266_s24, 1  ;;  %p188_p3 = scmp.ne.s32.totalorder %s1526_s19, %s1522_s18 }
   0x8   : > { %s1885_s26 = smov (%p39_p0, %s37_s26), 0  ;;  %p189_p5 = scmp.eq.s32.totalorder %s1267_s25, 1 }
   0x9   : > { %p1624_p4 = por %p183_p2, %p182_p1  ;;  %s167_s29 = ssub.s32 %s1538_s22, %s1885_s26 }
   0xa   : > { %p1270_p6 = scmp.ge.s32.totalorder %s1542_s23, 1  ;;  %p170_p7 = scmp.eq.s32.totalorder %s167_s29, 0 }
   0xb   : > { %p1631_p8 = por %p189_p5, %p188_p3  ;;  %p246_p9 = scmp.lt.s32.totalorder %s1542_s23, 3 }
   0xc   : > { %s1637_s6 = scalar_select %p170_p7, %s1530_s20, %s172_s27  }
   0xd   : > { %p247_p10 = pnand %p1270_p6, %p246_p9 }
   0xe   : > { %p293_p11 = scmp.lt.s32.totalorder (!%p247_p10), %s1534_s21, 1  ;;  %vm331_vm0 = vcmask (!%p247_p10), 64512   ;;  %v1544_v0 = vmov (!%p247_p10), 0.0   ;;  %vm1545_vm1 = vmmov (!%p247_p10), 0   ;;  %vm322_vm2 = vcmask (!%p247_p10), 7168   ;;  %s1552_s9 = smov (!%p247_p10), 24  }
   0xf   : > { %250 = sbr.rel (%p247_p10) target bundleno = 1216 (0x4c0), region = 40  ;;  %1316 = vmatprep.subr.bf16.mxu0 (!%p247_p10), %v1544_v0  ;;  %332 = vst.msk [vmem:[#allocation4] sm:$0xff] (!%p247_p10), %vm331_vm0, %v1544_v0  ;;  %333 = vst.msk [vmem:[#allocation4 + $0x8] sm:$0xff] (!%p247_p10), %vm331_vm0, %v1544_v0  ;;  %1322 = vmatprep.subr.bf16.mxu1 (!%p247_p10), %v1544_v0  ;;  %v1546_v13 = vmov (!%p247_p10), -inf   ;;  %v1547_v34 = vmov (!%p247_p10), 0   ;;  %vm661_vm3 = vcmask (!%p247_p10), 1043456  }
  0x10   : > { %334 = vst.msk [vmem:[#allocation4 + $0x10] sm:$0xff] (!%p247_p10), %vm331_vm0, %v1544_v0  ;;  %335 = vst.msk [vmem:[#allocation4 + $0x18] sm:$0xff] (!%p247_p10), %vm331_vm0, %v1544_v0  ;;  %1318 = vmatprep.mubr.msk.bf16.mxu0 (!%p247_p10), %vm1545_vm1, %v1544_v0  ;;  %1324 = vmatprep.mubr.msk.bf16.mxu1 (!%p247_p10), %vm1545_vm1, %v1544_v0  ;;  %vm1065_vm4 = vcmask (!%p247_p10), 130048   ;;  %vm1068_vm5 = vcmask (!%p247_p10), 195584   ;;  %vm1094_vm6 = vcmask (!%p247_p10), 261120   ;;  %s290_s10 = sand.u32 (!%p247_p10), 1, %s1526_s19  }
  0x11   : > { %323 = vst.msk [vmem:[#allocation2] sm:$0xff] (!%p247_p10), %vm322_vm2, %v1546_v13  ;;  %324 = vst.msk [vmem:[#allocation2 + $0x8] sm:$0xff] (!%p247_p10), %vm322_vm2, %v1546_v13  ;;  %1436 = vset.pattern.permute.xlu0 (!%p247_p10), %v1547_v34  ;;  %1437 = vset.pattern.permute.xlu1 (!%p247_p10), %v1547_v34  ;;  %s1553_s29 = smov (!%p247_p10), [#allocation5]  }
  0x12   : > { %325 = vst.msk [vmem:[#allocation2 + $0x10] sm:$0xff] (!%p247_p10), %vm322_vm2, %v1546_v13  ;;  %326 = vst.msk [vmem:[#allocation2 + $0x18] sm:$0xff] (!%p247_p10), %vm322_vm2, %v1546_v13 }
  0x13   : > { %327 = vst.msk [vmem:[#allocation3] sm:$0xff] (!%p247_p10), %vm322_vm2, %v1544_v0  ;;  %328 = vst.msk [vmem:[#allocation3 + $0x8] sm:$0xff] (!%p247_p10), %vm322_vm2, %v1544_v0 }
  0x14   : > { %329 = vst.msk [vmem:[#allocation3 + $0x10] sm:$0xff] (!%p247_p10), %vm322_vm2, %v1544_v0  ;;  %330 = vst.msk [vmem:[#allocation3 + $0x18] sm:$0xff] (!%p247_p10), %vm322_vm2, %v1544_v0 }
  0x16   : > { %s294_s7 = scalar_select %p293_p11, %s1534_s21, 1 }
  0x18   : > { %s1655_s8 = sshll.u32 %s294_s7, 4  ;;  %v1715_v35 = vld [vmem:[#allocation2] sm:$0xff]  ;;  %v1720_v38 = vld [vmem:[#allocation2 + $0x8] sm:$0xff]  ;;  %s1550_s7 = smov 8  }
  0x19   : > { %s308_s11 = scalar_lea.vmem %s1872_s1, %s1655_s8  ;;  %s300_s14 = scalar_lea.vmem %s1871_s0, %s1655_s8  ;;  %v1730_v42 = vld [vmem:[#allocation2 + $0x10] sm:$0xff]  ;;  %v1740_v46 = vld [vmem:[#allocation2 + $0x18] sm:$0xff] }
  0x1a   : > { %v340_v1 = vld [vmem:[%s308_s11] sm:$0xf]  ;;  %v341_v2 = vld [vmem:[%s308_s11 + $0x4] sm:$0xf]  ;;  %v342_v5 = vld [vmem:[%s308_s11 + $0x8] sm:$0xf]  ;;  %s316_s17 = scalar_lea.vmem %s1873_s2, %s1655_s8 }
  0x1b   : > { %v353_v3 = vsel %vm331_vm0, %v340_v1, 0  ;;  %v399_v4 = vsel %vm331_vm0, %v341_v2, 0  ;;  %v343_v6 = vld [vmem:[%s308_s11 + $0xc] sm:$0xf]  ;;  %v336_v7 = vld [vmem:[%s300_s14] sm:$0xf] }
  0x1c   : > { %1317 = vmatpush3.bf16.xpose.msra.mxu0 %v353_v3  ;;  %1323 = vmatpush3.bf16.xpose.msra.mxu1 %v399_v4  ;;  %v337_v8 = vld [vmem:[%s300_s14 + $0x4] sm:$0xf]  ;;  %v445_v9 = vsel %vm331_vm0, %v342_v5, 0  ;;  %v491_v10 = vsel %vm331_vm0, %v343_v6, 0  ;;  %v338_v11 = vld [vmem:[%s300_s14 + $0x8] sm:$0xf] }
  0x1d   : > { %1328 = vmatprep.subr.bf16.mxu0 %v1544_v0  ;;  %1334 = vmatprep.subr.bf16.mxu1 %v1544_v0  ;;  %v339_v12 = vld [vmem:[%s300_s14 + $0xc] sm:$0xf]  ;;  %v344_v51 = vld [vmem:[%s316_s17] sm:$0xf]  ;;  %v345_v53 = vld [vmem:[%s316_s17 + $0x4] sm:$0xf] }
  0x1e   : > { %v663_v52 = vsel %vm661_vm3, %v344_v51, 0  ;;  %v709_v54 = vsel %vm661_vm3, %v345_v53, 0  ;;  %v346_v55 = vld [vmem:[%s316_s17 + $0x8] sm:$0xf]  ;;  %v347_v57 = vld [vmem:[%s316_s17 + $0xc] sm:$0xf] }
  0x1f   : > { %v755_v56 = vsel %vm661_vm3, %v346_v55, 0  ;;  %v801_v58 = vsel %vm661_vm3, %v347_v57, 0  ;;  %v626_v53 = vld [vmem:[#allocation4] sm:$0xff]  ;;  %v627_v57 = vld [vmem:[#allocation4 + $0x8] sm:$0xff]  ;;  %s1551_s8 = smov 16   ;;  %s1271_s11 = sshll.u32 %s290_s10, 3 }
  0x20   : > { %v1438_v55 = vld [vmem:[%s1874_s3] sm:$0xff]   ;;  %s1291_s14 = sshll.u32 %s1534_s21, 7  ;;  %s292_s15 = scalar_lea.vmem [#allocation5], %s1271_s11 }
  0x21   : > { %s1153_s16 = sshll.u32 %s292_s15, 4  ;;  %s1823_s25 = scalar_lea.hbm %s1876_s5, %s1291_s14  ;;  %s1825_s16 = int_to_ptr.vmem [resolvable:$true] %s1153_s16 }
  0x22   : > { %s1139_s21 = scalar_lea.sflag [#allocation6], %s290_s10  ;;  %s1464_s27 = scalar_lea.vmem %s1825_s16, 128 }
  0x23   : > { %1319 = vmatmul.mubr.msk.bf16.vlgmr.msra.gmra.mrb[0].mxu0 %vm331_vm0, %v336_v7  ;;  %1325 = vmatmul.mubr.msk.bf16.vlgmr.msra.gmra.mrb[0].mxu1 %vm331_vm0, %v337_v8  ;;  %p1465_p12 = scmp.ne.s32.totalorder %s1825_s16, %s1464_s27 }
  0x24   : > { %1329 = vmatpush3.bf16.xpose.msra.mxu0 %v445_v9  ;;  %1335 = vmatpush3.bf16.xpose.msra.mxu1 %v491_v10 }
  0x25   : > { %1330 = vmatprep.mubr.msk.bf16.mxu0 %vm1545_vm1, %v1544_v0  ;;  %1336 = vmatprep.mubr.msk.bf16.mxu1 %vm1545_vm1, %v1544_v0  ;;  %p1466_p13 = pnand %p1465_p12, %p1624_p4 }
  0x26   : > { %1340 = vmatprep.subr.bf16.mxu0 %v1544_v0  ;;  %1346 = vmatprep.subr.bf16.mxu1 %v1544_v0 }
  0x27   : > { %p1467_p0 = pneg %p1466_p13 }
  0x2b   : > { %1331 = vmatmul.mubr.msk.bf16.vlgmr.msra.gmra.mrb[4].mxu0 %vm331_vm0, %v338_v11  ;;  %1337 = vmatmul.mubr.msk.bf16.vlgmr.msra.gmra.mrb[4].mxu1 %vm331_vm0, %v339_v12 }
  0x2c   : > { %1342 = vmatprep.mubr.msk.bf16.mxu0 %vm1545_vm1, %v1544_v0  ;;  %1348 = vmatprep.mubr.msk.bf16.mxu1 %vm1545_vm1, %v1544_v0 }
  0x2d   : > { %1341 = vmatpush3.bf16.msra.mxu0 %v663_v52  ;;  %1347 = vmatpush3.bf16.msra.mxu1 %v709_v54 }
  0x2e   : > { %1352 = vmatprep.subr.bf16.mxu0 %v1544_v0  ;;  %1358 = vmatprep.subr.bf16.mxu1 %v1544_v0 }
  0xf6   : > { %v1697_v14 = vpop.f32.mrb[0].mxu0  ;;  %v1699_v15 = vpop.f32.mrb[0].mxu1 }
  0xf7   : > { %v1320_v16 = vpop.f32.mrb[1].mxu0  ;;  %v537_v17 = vsel %vm331_vm0, %v1697_v14, -inf  ;;  %v1326_v18 = vpop.f32.mrb[1].mxu1  ;;  %v540_v23 = vsel %vm331_vm0, %v1699_v15, -inf }
  0xf8   : > { %538 = vmax.xlane.f32.xlu0 %v537_v17  ;;  %v392_v19 = vpop.f32.mrb[2].mxu0  ;;  %v438_v20 = vpop.f32.mrb[2].mxu1 }
  0xf9   : > { %v1321_v21 = vpop.f32.mrb[3].mxu0  ;;  %v1327_v22 = vpop.f32.mrb[3].mxu1 }
  0xfc   : > { %541 = vmax.xlane.f32.xlu0 %v540_v23 }
  0xfe   : > { %v1705_v24 = vpop.f32.mrb[4].mxu0  ;;  %v1707_v25 = vpop.f32.mrb[4].mxu1 }
  0xff   : > { %v1332_v26 = vpop.f32.mrb[5].mxu0  ;;  %v543_v27 = vsel %vm331_vm0, %v1705_v24, -inf  ;;  %v1338_v28 = vpop.f32.mrb[5].mxu1  ;;  %v546_v33 = vsel %vm331_vm0, %v1707_v25, -inf }
 0x100   : > { %544 = vmax.xlane.f32.xlu1 %v543_v27  ;;  %v484_v29 = vpop.f32.mrb[6].mxu0  ;;  %v530_v30 = vpop.f32.mrb[6].mxu1  ;;  %v597_v28 = vld [vmem:[#allocation3] sm:$0xff] }
 0x101   : > { %v1333_v31 = vpop.f32.mrb[7].mxu0  ;;  %v1339_v32 = vpop.f32.mrb[7].mxu1 }
 0x102   : > { %v598_v31 = vld [vmem:[#allocation3 + $0x8] sm:$0xff] }
 0x104   : > { %547 = vmax.xlane.f32.xlu1 %v546_v33 }
 0x185   : > { %v539_v36 = vpop.xlane.xlu0 %538 }
 0x186   : > { %v1718_v37 = vmax.f32 %v1715_v35, %v539_v36  ;;  %v599_v36 = vld [vmem:[#allocation3 + $0x10] sm:$0xff] }
 0x188   : > { %v553_v39 = vsub.f32 %v1715_v35, %v1718_v37  ;;  %851 = vst.msk [vmem:[#allocation2] sm:$0xff] %vm322_vm2, %v1718_v37  ;;  %567 = vperm.xlu0 %1436, %v1718_v37  }
 0x189   : > { %v542_v40 = vpop.xlane.xlu0 %541 }
 0x18a   : > { %v1728_v41 = vmax.f32 %v1720_v38, %v542_v40  ;;  %v557_v21 = vmul.f32 1.442695, %v553_v39  ;;  %v600_v40 = vld [vmem:[#allocation3 + $0x18] sm:$0xff] }
 0x18c   : > { %v554_v43 = vsub.f32 %v1720_v38, %v1728_v41  ;;  %852 = vst.msk [vmem:[#allocation2 + $0x8] sm:$0xff] %vm322_vm2, %v1728_v41  ;;  %572 = vperm.xlu1 %1437, %v1728_v41  }
 0x18d   : > { %v545_v44 = vpop.xlane.xlu1 %544 }
 0x18e   : > { %v1738_v45 = vmax.f32 %v1730_v42, %v545_v44  ;;  %v559_v18 = vmul.f32 1.442695, %v554_v43 }
 0x190   : > { %v555_v47 = vsub.f32 %v1730_v42, %v1738_v45  ;;  %853 = vst.msk [vmem:[#allocation2 + $0x10] sm:$0xff] %vm322_vm2, %v1738_v45  ;;  %577 = vperm.xlu1 %1437, %v1738_v45  }
 0x191   : > { %v548_v48 = vpop.xlane.xlu1 %547 }
 0x192   : > { %v1748_v49 = vmax.f32 %v1740_v46, %v548_v48  ;;  %v561_v22 = vmul.f32 1.442695, %v555_v47 }
 0x194   : > { %v556_v50 = vsub.f32 %v1740_v46, %v1748_v49  ;;  %854 = vst.msk [vmem:[#allocation2 + $0x18] sm:$0xff] %vm322_vm2, %v1748_v49  ;;  %582 = vperm.xlu1 %1437, %v1748_v49  }
 0x196   : > { %v563_v23 = vmul.f32 1.442695, %v556_v50 }
 0x207   : > { %v568_v59 = vpop.permute.xlu0 %567 }
 0x208   : > { %v585_v60 = vsub.f32 %v1697_v14, %v568_v59 }
 0x20a   : > { %v589_v61 = vmul.f32 1.442695, %v585_v60 }
 0x20b   : > { %v573_v62 = vpop.permute.xlu1 %572 }
 0x20c   : > { %1440 = vpow2.f32 %v589_v61  ;;  %v586_v63 = vsub.f32 %v1699_v15, %v573_v62 }
 0x20e   : > { %v591_v1 = vmul.f32 1.442695, %v586_v63 }
 0x20f   : > { %v578_v2 = vpop.permute.xlu1 %577 }
 0x210   : > { %1442 = vpow2.f32 %v591_v1  ;;  %v587_v3 = vsub.f32 %v1705_v24, %v578_v2 }
 0x212   : > { %v593_v4 = vmul.f32 1.442695, %v587_v3  ;;  %v628_v3 = vld [vmem:[#allocation4 + $0x10] sm:$0xff] }
 0x213   : > { %v583_v5 = vpop.permute.xlu1 %582 }
 0x214   : > { %1444 = vpow2.f32 %v593_v4  ;;  %v588_v6 = vsub.f32 %v1707_v25, %v583_v5 }
 0x216   : > { %v1441_v7 = vpop.eup %1440  ;;  %v595_v8 = vmul.f32 1.442695, %v588_v6 }
 0x217   : > { %v605_v9 = vsel %vm331_vm0, %v1441_v7, 0.0  ;;  %v654_v10 = vpack.c.bf16 %v1441_v7, %v1441_v7 }
 0x218   : > { %1446 = vpow2.f32 %v595_v8  ;;  %606 = vadd.xlane.f32.xlu1 %v605_v9 }
 0x219   : > { %1343 = vmatmul.mubr.msk.bf16.vlgmr.msra.gmra.mrb[8].mxu0 %vm331_vm0, %v654_v10  ;;  %1448 = vpow2.f32 %v559_v18  ;;  %v629_v10 = vld [vmem:[#allocation4 + $0x18] sm:$0xff] }
 0x21a   : > { %v1443_v11 = vpop.eup %1442  ;;  %1353 = vmatpush3.bf16.msra.mxu0 %v755_v56  ;;  %1354 = vmatprep.mubr.msk.bf16.mxu0 %vm1545_vm1, %v1544_v0  ;;  %1450 = vpow2.f32 %v557_v21 }
 0x21b   : > { %v608_v12 = vsel %vm331_vm0, %v1443_v11, 0.0  ;;  %v655_v13 = vpack.c.bf16 %v1443_v11, %v1443_v11  ;;  %1364 = vmatprep.subr.bf16.mxu0 %v1544_v0  ;;  %1452 = vpow2.f32 %v561_v22  ;;  %v1548_v22 = vmov 1983009808  }
 0x21c   : > { %609 = vadd.xlane.f32.xlu0 %v608_v12  ;;  %1454 = vpow2.f32 %v563_v23  ;;  %v896_v23 = vunpack.c.l.s4 %v1548_v22  ;;  %v1439_v22 = vld [vmem:[%s1874_s3 + $0x8] sm:$0xff]  }
 0x21d   : > { %1349 = vmatmul.mubr.msk.bf16.vlgmr.msra.gmra.mrb[8].mxu1 %vm331_vm0, %v655_v13 }
 0x21e   : > { %v1445_v14 = vpop.eup %1444  ;;  %1359 = vmatpush3.bf16.msra.mxu1 %v801_v58  ;;  %1360 = vmatprep.mubr.msk.bf16.mxu1 %vm1545_vm1, %v1544_v0 }
 0x21f   : > { %v611_v15 = vsel %vm331_vm0, %v1445_v14, 0.0  ;;  %v656_v16 = vpack.c.bf16 %v1445_v14, %v1445_v14 }
 0x220   : > { %612 = vadd.xlane.f32.xlu1 %v611_v15 }
 0x221   : > { %1355 = vmatmul.mubr.msk.bf16.vlgmr.msra.gmra.mrb[12].mxu0 %vm331_vm0, %v656_v16 }
 0x222   : > { %v1447_v17 = vpop.eup %1446  ;;  %1368 = vmatprep.mubr.msk.bf16.mxu0 %vm1545_vm1, %v1544_v0  ;;  %1365 = vmatpush3.bf16.msra.mxu0 %v1438_v55 }
 0x223   : > { %v614_v19 = vsel %vm331_vm0, %v1447_v17, 0.0  ;;  %v657_v20 = vpack.c.bf16 %v1447_v17, %v1447_v17  ;;  %v1449_v24 = vpop.eup %1448  ;;  %1366 = vmatprep.subr.bf16.mxu0 %v1544_v0 }
 0x224   : > { %615 = vadd.xlane.f32.xlu1 %v614_v19  ;;  %v1451_v25 = vpop.eup %1450  ;;  %v602_v33 = vmul.f32 %v1449_v24, %v598_v31 }
 0x225   : > { %1361 = vmatmul.mubr.msk.bf16.vlgmr.msra.gmra.mrb[12].mxu1 %vm331_vm0, %v657_v20  ;;  %v1453_v26 = vpop.eup %1452  ;;  %v601_v29 = vmul.f32 %v1451_v25, %v597_v28 }
 0x226   : > { %v1455_v27 = vpop.eup %1454  ;;  %v603_v38 = vmul.f32 %v1453_v26, %v599_v36  ;;  %1367 = vmatpush3.bf16.msra.mxu0 %v1439_v22 }
 0x227   : > { %v604_v43 = vmul.f32 %v1455_v27, %v600_v40 }
 0x232   : > { %637 = vperm.xlu0 %1436, %v1449_v24   ;;  %v898_v24 = vlaneseq }
 0x234   : > { %v899_v28 = vshrl.u32 %v898_v24, 7 }
 0x235   : > { %632 = vperm.xlu1 %1437, %v1451_v25  }
 0x239   : > { %642 = vperm.xlu1 %1437, %v1453_v26  }
 0x23d   : > { %647 = vperm.xlu1 %1437, %v1455_v27   ;;  %v897_v27 = vunpack.c.0.s8 %v896_v23 }
 0x23f   : > { %v900_v36 = vsub.s32 %v897_v27, %v899_v28 }
 0x2a5   : > { %v607_v30 = vpop.xlane.xlu1 %606 }
 0x2a6   : > { %v617_v32 = vadd.f32 %v607_v30, %v601_v29  ;;  %v1549_v30 = vmov 1934713408  }
 0x2a7   : > { %v913_v31 = vunpack.c.l.s4 %v1549_v30 }
 0x2a8   : > { %622 = vst.msk [vmem:[#allocation3] sm:$0xff] %vm322_vm2, %v617_v32 }
 0x2a9   : > { %v610_v35 = vpop.xlane.xlu0 %609 }
 0x2aa   : > { %v618_v37 = vadd.f32 %v610_v35, %v602_v33 }
 0x2ac   : > { %623 = vst.msk [vmem:[#allocation3 + $0x8] sm:$0xff] %vm322_vm2, %v618_v37 }
 0x2ad   : > { %v613_v39 = vpop.xlane.xlu1 %612 }
 0x2ae   : > { %v619_v41 = vadd.f32 %v613_v39, %v603_v38  ;;  %v914_v39 = vunpack.c.0.s8 %v913_v31 }
 0x2af   : > { %v862_v42 = vld [vmem:[#allocation3] sm:$0xff] }
 0x2b0   : > { %624 = vst.msk [vmem:[#allocation3 + $0x10] sm:$0xff] %vm322_vm2, %v619_v41  ;;  %1456 = vrcp.f32 %v862_v42 }
 0x2b1   : > { %v616_v44 = vpop.xlane.xlu1 %615  ;;  %v638_v58 = vpop.permute.xlu0 %637 }
 0x2b2   : > { %v620_v45 = vadd.f32 %v616_v44, %v604_v43  ;;  %v651_v1 = vmul.f32 %v638_v58, %v627_v57 }
 0x2b3   : > { %v863_v46 = vld [vmem:[#allocation3 + $0x8] sm:$0xff] }
 0x2b4   : > { %625 = vst.msk [vmem:[#allocation3 + $0x18] sm:$0xff] %vm322_vm2, %v620_v45  ;;  %1458 = vrcp.f32 %v863_v46  ;;  %v917_v46 = vsub.s32 %v914_v39, %v899_v28 }
 0x2b5   : > { %v633_v54 = vpop.permute.xlu1 %632 }
 0x2b6   : > { %v650_v56 = vmul.f32 %v633_v54, %v626_v53 }
 0x2b7   : > { %v864_v47 = vld [vmem:[#allocation3 + $0x10] sm:$0xff] }
 0x2b8   : > { %1460 = vrcp.f32 %v864_v47 }
 0x2b9   : > { %v643_v62 = vpop.permute.xlu1 %642 }
 0x2ba   : > { %v1457_v48 = vpop.eup %1456  ;;  %v652_v8 = vmul.f32 %v643_v62, %v628_v3 }
 0x2bb   : > { %872 = vperm.xlu1 %1437, %v1457_v48   ;;  %v865_v49 = vld [vmem:[#allocation3 + $0x18] sm:$0xff] }
 0x2bc   : > { %1462 = vrcp.f32 %v865_v49 }
 0x2bd   : > { %v648_v11 = vpop.permute.xlu1 %647 }
 0x2be   : > { %v1459_v50 = vpop.eup %1458  ;;  %v653_v15 = vmul.f32 %v648_v11, %v629_v10 }
 0x2bf   : > { %877 = vperm.xlu0 %1436, %v1459_v50  }
 0x2c2   : > { %v1461_v51 = vpop.eup %1460 }
 0x2c3   : > { %882 = vperm.xlu1 %1437, %v1461_v51  }
 0x2c6   : > { %v1463_v52 = vpop.eup %1462 }
 0x2c7   : > { %887 = vperm.xlu0 %1436, %v1463_v52  }
 0x2ec   : > { %v699_v59 = vpop.f32.mrb[8].mxu0 }
 0x2ed   : > { %v843_v60 = vadd.f32 %v699_v59, %v650_v56  ;;  %v1344_v61 = vpop.f32.mrb[9].mxu0 }
 0x2ee   : > { %v702_v63 = vpop.f32.mrb[10].mxu0 }
 0x2ef   : > { %847 = vst.msk [vmem:[#allocation4] sm:$0xff] %vm331_vm0, %v843_v60  ;;  %v1345_v2 = vpop.f32.mrb[11].mxu0 }
 0x2f0   : > { %v745_v4 = vpop.f32.mrb[8].mxu1 }
 0x2f1   : > { %v844_v5 = vadd.f32 %v745_v4, %v651_v1  ;;  %v1350_v6 = vpop.f32.mrb[9].mxu1 }
 0x2f2   : > { %v748_v7 = vpop.f32.mrb[10].mxu1 }
 0x2f3   : > { %848 = vst.msk [vmem:[#allocation4 + $0x8] sm:$0xff] %vm331_vm0, %v844_v5  ;;  %v1351_v9 = vpop.f32.mrb[11].mxu1 }
 0x2f4   : > { %v791_v0 = vpop.f32.mrb[12].mxu0 }
 0x2f5   : > { %v845_v12 = vadd.f32 %v791_v0, %v652_v8  ;;  %v1356_v13 = vpop.f32.mrb[13].mxu0 }
 0x2f6   : > { %v794_v14 = vpop.f32.mrb[14].mxu0  ;;  %v858_v26 = vld [vmem:[#allocation4] sm:$0xff] }
 0x2f7   : > { %849 = vst.msk [vmem:[#allocation4 + $0x10] sm:$0xff] %vm331_vm0, %v845_v12  ;;  %v1357_v16 = vpop.f32.mrb[15].mxu0 }
 0x2f8   : > { %v837_v17 = vpop.f32.mrb[12].mxu1 }
 0x2f9   : > { %v846_v18 = vadd.f32 %v837_v17, %v653_v15  ;;  %v1362_v19 = vpop.f32.mrb[13].mxu1 }
 0x2fa   : > { %v840_v20 = vpop.f32.mrb[14].mxu1  ;;  %v859_v38 = vld [vmem:[#allocation4 + $0x8] sm:$0xff] }
 0x2fb   : > { %850 = vst.msk [vmem:[#allocation4 + $0x18] sm:$0xff] %vm331_vm0, %v846_v18  ;;  %v1363_v21 = vpop.f32.mrb[15].mxu1 }
 0x2fe   : > { %v860_v35 = vld [vmem:[#allocation4 + $0x10] sm:$0xff] }
 0x302   : > { %v861_v44 = vld [vmem:[#allocation4 + $0x18] sm:$0xff] }
 0x33a   : > { %v873_v25 = vpop.permute.xlu1 %872 }
 0x33b   : > { %v890_v29 = vmul.f32 %v873_v25, %v858_v26 }
 0x33d   : > { %v894_v37 = vpack.c.bf16 %v890_v29, %v890_v29 }
 0x33e   : > { %v878_v32 = vpop.permute.xlu0 %877 }
 0x33f   : > { %v891_v41 = vmul.f32 %v878_v32, %v859_v38  ;;  %v901_v45 = vrot.slane %v894_v37, %v900_v36 }
 0x341   : > { %v928_v49 = vpack.c.bf16 %v891_v41, %v891_v41 }
 0x342   : > { %v883_v33 = vpop.permute.xlu1 %882 }
 0x343   : > { %v892_v40 = vmul.f32 %v883_v33, %v860_v35  ;;  %v935_v55 = vrot.slane %v928_v49, %v900_v36 }
 0x345   : > { %v902_v42 = vpack.c.bf16 %v892_v40, %v892_v40 }
 0x346   : > { %v888_v43 = vpop.permute.xlu0 %887 }
 0x347   : > { %v909_v47 = vrot.slane %v902_v42, %v900_v36  ;;  %v893_v48 = vmul.f32 %v888_v43, %v861_v44 }
 0x349   : > { %v910_v50 = vcombine.low %v901_v45, %v909_v47  ;;  %v911_v51 = vcombine.high %v901_v45, %v909_v47  ;;  %v936_v52 = vpack.c.bf16 %v893_v48, %v893_v48 }
 0x34b   : > { %v918_v53 = vrot.slane %v910_v50, %v917_v46  ;;  %v943_v54 = vrot.slane %v936_v52, %v900_v36  ;;  %v925_v56 = vrot.slane %v911_v51, %v917_v46 }
 0x34d   : > { %v944_v57 = vcombine.low %v935_v55, %v943_v54  ;;  %v945_v58 = vcombine.high %v935_v55, %v943_v54  ;;  %v926_v59 = vcombine.high %v918_v53, %v1547_v34  ;;  %v927_v62 = vcombine.high %v925_v56, %v1547_v34 }
 0x34e   : > { %v966_v63 = vshrl.u32 %v918_v53, 16  ;;  %v982_v6 = vshrl.u32 %v925_v56, 16 }
 0x34f   : > { %v952_v60 = vrot.slane %v944_v57, %v917_v46  ;;  %v959_v61 = vrot.slane %v945_v58, %v917_v46  ;;  %v974_v5 = vshrl.u32 %v926_v59, 16  ;;  %v990_v12 = vshrl.u32 %v927_v62, 16 }
 0x351   : > { %v960_v1 = vcombine.high %v952_v60, %v1547_v34  ;;  %v961_v2 = vcombine.high %v959_v61, %v1547_v34  ;;  %v964_v3 = vpack.i.b16 %v952_v60, %v918_v53  ;;  %v967_v4 = vshrl.u32 %v952_v60, 16 }
 0x352   : > { %v980_v7 = vpack.i.b16 %v959_v61, %v925_v56  ;;  %v983_v8 = vshrl.u32 %v959_v61, 16 }
 0x353   : > { %v968_v9 = vpack.i.b16 %v967_v4, %v966_v63  ;;  %v972_v10 = vpack.i.b16 %v960_v1, %v926_v59  ;;  %v975_v11 = vshrl.u32 %v960_v1, 16  ;;  %v988_v0 = vpack.i.b16 %v961_v2, %v927_v62 }
 0x354   : > { %v984_v13 = vpack.i.b16 %v983_v8, %v982_v6  ;;  %v991_v14 = vshrl.u32 %v961_v2, 16  ;;  %v994_v15 = vcombine.low %v964_v3, %v980_v7 }
 0x355   : > { %v976_v16 = vpack.i.b16 %v975_v11, %v974_v5  ;;  %v1002_v17 = vcombine.low %v972_v10, %v988_v0 }
 0x356   : > { %v992_v18 = vpack.i.b16 %v991_v14, %v990_v12  ;;  %v1019_v19 = vcombine.low %v968_v9, %v984_v13  ;;  %v1001_v20 = vrot.slane %v994_v15, %v900_v36 }
 0x357   : > { %v1009_v21 = vrot.slane %v1002_v17, %v900_v36 }
 0x358   : > { %v1027_v23 = vcombine.low %v976_v16, %v992_v18  ;;  %v1026_v25 = vrot.slane %v1019_v19, %v900_v36 }
 0x359   : > { %v1010_v24 = vcombine.low %v1001_v20, %v1009_v21 }
 0x35a   : > { %v1034_v26 = vrot.slane %v1027_v23, %v900_v36 }
 0x35b   : > { %v1017_v27 = vrot.slane %v1010_v24, %v917_v46 }
 0x35c   : > { %v1035_v28 = vcombine.low %v1026_v25, %v1034_v26 }
 0x35d   : > { %v1047_v30 = vshrl.u32 %v1017_v27, 16  ;;  %v1018_v32 = vcombine.high %v1017_v27, %v1547_v34 }
 0x35e   : > { %v1042_v29 = vrot.slane %v1035_v28, %v917_v46  ;;  %v1286_v46 = vld [vmem:[%s1875_s4] ss:$0 sm:$0xff] }
 0x35f   : > { %v1053_v40 = vshrl.u32 %v1018_v32, 16 }
 0x360   : > { %v1048_v31 = vshrl.u32 %v1042_v29, 16  ;;  %v1043_v33 = vcombine.high %v1042_v29, %v1547_v34  ;;  %v1046_v35 = vpack.i.b16 %v1042_v29, %v1017_v27 }
 0x362   : > { %v1049_v37 = vpack.i.b16 %v1048_v31, %v1047_v30  ;;  %v1052_v38 = vpack.i.b16 %v1043_v33, %v1018_v32  ;;  %v1054_v39 = vshrl.u32 %v1043_v33, 16 }
 0x364   : > { %1056 = vrot.lane.b32.xlu1 %v1049_v37, %s1550_s7  ;;  %1058 = vrot.lane.b32.xlu0 %v1052_v38, %s1551_s8  ;;  %v1055_v36 = vpack.i.b16 %v1054_v39, %v1053_v40  ;;  %s1468_s7 = sshll.u32 %s1553_s29, 4  ;;  %s1469_s7 = int_to_ptr.vmem [resolvable:$false] %s1468_s7 }
 0x365   : > { %s1470_s8 = scalar_lea.vmem %s1469_s7, 256  ;;  %p1471_p1 = scmp.lt.s32.totalorder %s1825_s16, %s1469_s7 }
 0x366   : > { %p1472_p2 = scmp.lt.s32.totalorder %s1470_s8, %s1464_s27 }
 0x368   : > { %1060 = vrot.lane.b32.xlu1 %v1055_v36, %s1552_s9  ;;  %p1473_p3 = por %p1472_p2, %p1471_p1 }
 0x36a   : > { %p1474_p5 = pnand %p1473_p3, %p1467_p0 }
 0x3d6   : > { %v1057_v41 = vpop.permute.xlu1 %1056  ;;  %v1059_v43 = vpop.permute.xlu0 %1058 }
 0x3d7   : > { %v1064_v42 = vsel %vm331_vm0, %v1046_v35, %v1057_v41 }
 0x3d8   : > { %v1067_v34 = vsel %vm1065_vm4, %v1064_v42, %v1059_v43 }
 0x3da   : > { %v1061_v44 = vpop.permute.xlu1 %1060 }
 0x3db   : > { %v1070_v45 = vsel %vm1068_vm5, %v1067_v34, %v1061_v44 }
 0x3dc   : > { %1369 = vmatmul.mubr.msk.bf16.vlgmr.msra.gmra.mrb[16].mxu0 %vm1094_vm6, %v1070_v45 }
 0x4af   : > { %v1131_v47 = vpop.f32.mrb[16].mxu0 }
 0x4b0   : > { %v1132_v48 = vadd.f32 %v1286_v46, %v1131_v47  ;;  %v1370_v49 = vpop.f32.mrb[17].mxu0 }
 0x4b1   : > { %v1134_v50 = vpop.f32.mrb[18].mxu0 }
 0x4b2   : > { %v1371_v51 = vpop.f32.mrb[19].mxu0  ;;  %1137 = vst.msk [vmem:[%s292_s15] sm:$0xff] %vm1094_vm6, %v1132_v48 }
 0x4b3   : > { %1477 = shalt.err (!%p1474_p5)
}
 0x4b4   : > { %s1478_s9 = scalar_lea.hbm %s1823_s25, 128  ;;  %s1482_s12 = scalar_lea.hbm %s1876_s5, 256 }
 0x4b5   : > { %p1479_p6 = scmp.ne.s32.totalorder %s1823_s25, %s1478_s9  ;;  %p1483_p10 = scmp.lt.u32.totalorder %s1823_s25, %s1876_s5 }
 0x4b6   : > { %p1484_p11 = scmp.lt.u32.totalorder %s1482_s12, %s1478_s9  ;;  %p1486_p13 = scmp.lt.u32.totalorder %s1478_s9, %s1823_s25 }
 0x4b7   : > { %p1480_p7 = pnand %p1479_p6, %p1624_p4 }
 0x4b8   : > { %p1485_p12 = por %p1484_p11, %p1483_p10 }
 0x4b9   : > { %p1481_p9 = pneg %p1480_p7 }
 0x4ba   : > { %p1487_p0 = por %p1486_p13, %p1485_p12 }
 0x4bc   : > { %p1488_p1 = pnand %p1487_p0, %p1481_p9 }
 0x4be   : > { %1491 = shalt.err (!%p1488_p1)
}
 0x4bf   : > { %1372 = dma.vmem_to_hbm [thread:$0]  (%p1624_p4), %s1825_s16, 128, %s1823_s25, %s1139_s21  }
 0x4c0 PF: > { %p1378_p2 = scmp.ge.s32.totalorder %s1542_s23, 2  ;;  %s1165_s15 = sand.u32 1, %s1522_s18  }
 0x4c1   : > { %s1166_s17 = scalar_lea.sflag [#allocation6], %s1165_s15 }
 0x4c2   : > { %p1375_p3 = pnand %p1378_p2, %p1631_p8 }
 0x4c4   : > { %1517 = dma.done.wait (!%p1375_p3), %s1166_s17, 128  }
 0x4c5   : > { %1519 = vsyncadd (!%p1375_p3), %s1166_s17, 4294967168  ;;  %s18_s23 = sadd.s32 1, %s1542_s23   ;;  %s1879_s18 = smov %s1526_s19 }
 0x4c6   : > { %p15_p5 = scmp.ge.s32.totalorder %s18_s23, 4   ;;  %s1880_s19 = smov %s1530_s20 }
 0x4c7   : > { %s1881_s20 = smov %s1637_s6  ;;  %s1882_s21 = smov %s1538_s22 }
 0x4c8   : > { %s1883_s22 = smov %s1885_s26  ;;  %17 = sbr.rel (!%p15_p5) target bundleno = 4 (0x4), region = 89 }
 0x4cf   :  { %1171 = vsyncpa [#allocation6], 1 }
 0x4d0   :  { %1173 = vsyncpa [#allocation6 + $0x1], 1 }

</bundles_post_ra>
